<compile_context>
chip_gen: v7x
topology: tpu7x:2x2x1
jax: 0.10.0
libtpu: 0.0.40
codegen_flags: <defaults>
</compile_context>

<pallas_src>
import functools
import math

import numpy as np
import jax
import jax.numpy as jnp
from jax.experimental import pallas as pl
from jax.experimental.pallas import tpu as pltpu


# ----------------------------------------------------------------------------
# Fused Pallas kernel: full DynamicGCNet forward for one batch element
# ----------------------------------------------------------------------------
def _fused_gcnet_kernel(x_ref, logits_ref,
                        w_in_ref, a_in_ref, c_in_ref,
                        w_mid_ref, a_mid_ref, c_mid_ref,
                        w_out_ref, b_out_ref,
                        out_ref, *, num_layers):
    V = logits_ref.shape[1]
    x = x_ref[0].astype(jnp.float32)             # (V, Cin)
    logits = logits_ref[0].astype(jnp.float32)   # (V, V) masked adjacency logits

    # Row softmax of the masked adjacency, computed ONCE (shared by all layers).
    m = jnp.max(logits, axis=-1, keepdims=True)
    e = jnp.exp(logits - m)
    p = e * pl.reciprocal(jnp.sum(e, axis=-1, keepdims=True), approx=True)  # (V, V)

    # Diagonal of p (== diagonal of p^T), extracted once.
    row = jax.lax.broadcasted_iota(jnp.int32, (V, V), 0)
    col = jax.lax.broadcasted_iota(jnp.int32, (V, V), 1)
    d = jnp.sum(jnp.where(row == col, p, 0.0), axis=-1, keepdims=True)      # (V, 1)

    # p^T @ h without materialising the transpose: contract over axis 0 of p.
    contract_k = (((0,), (0,)), ((), ()))

    def gconv(h, w, scale, shift, relu):
        # h: (V, Cin_l), w: (Cin_l, 2*Cout_l) == concat(W0, W1)
        cout = w.shape[1] // 2
        hw = jnp.dot(h, w, preferred_element_type=jnp.float32)              # (V, 2*Cout)
        h0 = hw[:, :cout]
        h1 = hw[:, cout:]
        # (p^T*I)@h0 + (p^T*(1-I))@h1  ==  diag(p)*(h0-h1) + p^T@h1
        out = d * (h0 - h1) + jax.lax.dot_general(
            p, h1, dimension_numbers=contract_k,
            preferred_element_type=jnp.float32)
        if scale is not None:                     # folded BatchNorm(eval) affine
            out = out * scale
        out = out + shift                         # bias folded into shift
        if relu:
            out = jnp.maximum(out, 0.0)
        return out

    # g_input: DynamicGCBlock (gconv + BN + ReLU)
    h = gconv(x, w_in_ref[...], a_in_ref[...], c_in_ref[...], relu=True)

    # g_layers: residual GC blocks (in == out == hid -> identity shortcut)
    for l in range(num_layers):
        res = h
        h = gconv(h, w_mid_ref[2 * l], a_mid_ref[2 * l], c_mid_ref[2 * l], relu=True)
        h = gconv(h, w_mid_ref[2 * l + 1], a_mid_ref[2 * l + 1], c_mid_ref[2 * l + 1],
                  relu=True)
        h = h + res

    # g_out: plain DynamicGConv (bias only, no BN, no ReLU)
    y = gconv(h, w_out_ref[...], None, b_out_ref[...], relu=False)
    out_ref[0] = y.astype(out_ref.dtype)


def dynamic_gcnet_fused(x, logits, packed, *, num_layers):
    """x: (B, V, Cin), logits: (B, V, V) -> (B, V, Cout)."""
    B, V, Cin = x.shape
    hid = packed["a_in"].shape[1]
    out_ch = packed["b_out"].shape[1]
    n_mid = 2 * num_layers

    kernel = functools.partial(_fused_gcnet_kernel, num_layers=num_layers)
    return pl.pallas_call(
        kernel,
        out_shape=jax.ShapeDtypeStruct((B, V, out_ch), jnp.float32),
        grid_spec=pltpu.PrefetchScalarGridSpec(
            num_scalar_prefetch=0,
            grid=(B,),
            in_specs=[
                pl.BlockSpec((1, V, Cin), lambda b: (b, 0, 0)),          # x
                pl.BlockSpec((1, V, V), lambda b: (b, 0, 0)),            # adjacency logits
                pl.BlockSpec((Cin, 2 * hid), lambda b: (0, 0)),          # W_in (W0|W1)
                pl.BlockSpec((1, hid), lambda b: (0, 0)),                # scale_in
                pl.BlockSpec((1, hid), lambda b: (0, 0)),                # shift_in (bias folded)
                pl.BlockSpec((n_mid, hid, 2 * hid), lambda b: (0, 0, 0)),  # W_mid stacked
                pl.BlockSpec((n_mid, 1, hid), lambda b: (0, 0, 0)),      # scale_mid stacked
                pl.BlockSpec((n_mid, 1, hid), lambda b: (0, 0, 0)),      # shift_mid stacked
                pl.BlockSpec((hid, 2 * out_ch), lambda b: (0, 0)),       # W_out (W0|W1)
                pl.BlockSpec((1, out_ch), lambda b: (0, 0)),             # bias_out
            ],
            out_specs=pl.BlockSpec((1, V, out_ch), lambda b: (b, 0, 0)),
        ),
        compiler_params=pltpu.CompilerParams(dimension_semantics=("parallel",)),
    )(x, logits,
      packed["w_in"], packed["a_in"], packed["c_in"],
      packed["w_mid"], packed["a_mid"], packed["c_mid"],
      packed["w_out"], packed["b_out"])


# ----------------------------------------------------------------------------
# Parameter initialization (deterministic, synthetic) + folding / packing
# ----------------------------------------------------------------------------
def _init_gconv_folded(key, cin, cout, with_bn):
    k1, k2 = jax.random.split(key)
    # xavier_uniform on (2, cin, cout) with gain=1.414:
    # fan_in = cin * cout, fan_out = 2 * cout
    bound = 1.414 * math.sqrt(6.0 / (cin * cout + 2 * cout))
    W = jax.random.uniform(k1, (2, cin, cout), jnp.float32, -bound, bound)
    wcat = jnp.concatenate([W[0], W[1]], axis=1)                   # (cin, 2*cout)
    stdv = 1.0 / math.sqrt(cout)
    bias = jax.random.uniform(k2, (1, cout), jnp.float32, -stdv, stdv)
    if with_bn:
        # BatchNorm1d default init (gamma=1, beta=0, running stats 0/1), eval mode.
        # TODO(synk): training-mode batch statistics (cross-batch reduction) not implemented.
        bn_scale = jnp.full((1, cout), 1.0 / math.sqrt(1.0 + 1e-5), jnp.float32)
        bn_shift = jnp.zeros((1, cout), jnp.float32)
        scale = bn_scale
        shift = bias * bn_scale + bn_shift       # fold bias into the BN affine
    else:
        scale = jnp.ones((1, cout), jnp.float32)
        shift = bias
    return wcat, scale, shift


def init_params(key, in_ch, hid_ch, out_ch, num_layers, V, nnz):
    keys = jax.random.split(key, 2 + 2 * num_layers + 2)
    # TODO(synk): RelationLearner definition not provided; deterministic linear stand-in.
    w_rel = jax.random.uniform(keys[0], (V, nnz), jnp.float32, -0.1, 0.1)

    w_in, a_in, c_in = _init_gconv_folded(keys[1], in_ch, hid_ch, with_bn=True)

    w_mid, a_mid, c_mid = [], [], []
    for i in range(2 * num_layers):
        w, a, c = _init_gconv_folded(keys[2 + i], hid_ch, hid_ch, with_bn=True)
        w_mid.append(w)
        a_mid.append(a)
        c_mid.append(c)

    w_out, _, b_out = _init_gconv_folded(keys[-1], hid_ch, out_ch, with_bn=False)

    packed = {
        "w_in": w_in, "a_in": a_in, "c_in": c_in,
        "w_mid": jnp.stack(w_mid),            # (2L, hid, 2*hid)
        "a_mid": jnp.stack(a_mid),            # (2L, 1, hid)
        "c_mid": jnp.stack(c_mid),            # (2L, 1, hid)
        "w_out": w_out, "b_out": b_out,
    }
    return {"W_rel": w_rel, "packed": packed}


# ----------------------------------------------------------------------------
# Full DynamicGCNet forward (glue in JAX, hot path in one fused Pallas kernel)
# ----------------------------------------------------------------------------
def dynamic_gcnet_forward(params, x_in, x, rows, cols, V, num_layers):
    B = x.shape[0]

    # --- relation_learner stand-in: x_in (B, 512, V) -> adj_weight (B, nnz) ---
    pooled = jnp.mean(x_in, axis=1)                       # (B, V)
    adj_weight = jnp.tanh(pooled @ params["W_rel"])       # (B, nnz)

    # adj = -9e15 * ones(B, V, V); adj[:, adj_mask] = adj_weight
    logits = jnp.full((B, V, V), -9000000000000000.0, dtype=jnp.float32)
    logits = logits.at[:, rows, cols].set(adj_weight)

    return dynamic_gcnet_fused(x, logits, params["packed"], num_layers=num_layers)


# ----------------------------------------------------------------------------
# Main
# ----------------------------------------------------------------------------
if __name__ == "__main__":
    key = jax.random.PRNGKey(0)
    B, V = 2, 16                       # batch, num_points
    in_ch, hid_ch, out_ch = 4, 32, 3   # in / hidden / out channels
    num_layers = 4

    # Fixed adjacency: ring with self-loops on V nodes (every row has >=3 edges,
    # so the masked softmax is well defined).
    adj_np = np.zeros((V, V), dtype=np.float32)
    for i in range(V):
        for j in range(V):
            if abs(i - j) <= 1 or abs(i - j) == V - 1:
                adj_np[i, j] = 1.0
    rows_np, cols_np = np.nonzero(adj_np > 0)
    rows = jnp.asarray(rows_np, jnp.int32)
    cols = jnp.asarray(cols_np, jnp.int32)
    nnz = int(rows_np.shape[0])

    k1, k2, k3 = jax.random.split(key, 3)
    params = init_params(k1, in_ch, hid_ch, out_ch, num_layers, V, nnz)
    x_in = jax.random.normal(k2, (B, 512, V), jnp.float32)   # relation-learner input
    x = jax.random.normal(k3, (B, V, in_ch), jnp.float32)    # graph node features

    out = dynamic_gcnet_forward(params, x_in, x, rows, cols, V, num_layers)
    out = jax.block_until_ready(out)
    assert out.shape == (B, V, out_ch)
    assert bool(jnp.all(jnp.isfinite(out)))
    print("KERNEL_OK")
</pallas_src>

<mosaic_0001>
module attributes {stable_mosaic.version = 11 : i64} {
  func.func @_fused_gcnet_kernel(%arg0: i32, %arg1: memref<1x16x4xf32, #tpu.memory_space<vmem>>, %arg2: memref<1x16x16xf32, #tpu.memory_space<vmem>>, %arg3: memref<4x64xf32, #tpu.memory_space<vmem>>, %arg4: memref<1x32xf32, #tpu.memory_space<vmem>>, %arg5: memref<1x32xf32, #tpu.memory_space<vmem>>, %arg6: memref<8x32x64xf32, #tpu.memory_space<vmem>>, %arg7: memref<8x1x32xf32, #tpu.memory_space<vmem>>, %arg8: memref<8x1x32xf32, #tpu.memory_space<vmem>>, %arg9: memref<32x6xf32, #tpu.memory_space<vmem>>, %arg10: memref<1x3xf32, #tpu.memory_space<vmem>>, %arg11: memref<1x16x3xf32, #tpu.memory_space<vmem>>) attributes {dimension_semantics = [#tpu.dimension_semantics<parallel>], iteration_bounds = array<i64: 2>, scalar_prefetch = 0 : i64, scratch_operands = 0 : i64, tpu.core_type = #tpu.core_type<tc>, window_params = [{transform_indices = @transform_0, window_bounds = array<i64: 1, 16, 4>}, {transform_indices = @transform_1, window_bounds = array<i64: 1, 16, 16>}, {pipeline_mode = #tpu.pipeline_mode<synchronous>, transform_indices = @transform_2, window_bounds = array<i64: 4, 64>}, {pipeline_mode = #tpu.pipeline_mode<synchronous>, transform_indices = @transform_3, window_bounds = array<i64: 1, 32>}, {pipeline_mode = #tpu.pipeline_mode<synchronous>, transform_indices = @transform_4, window_bounds = array<i64: 1, 32>}, {pipeline_mode = #tpu.pipeline_mode<synchronous>, transform_indices = @transform_5, window_bounds = array<i64: 8, 32, 64>}, {pipeline_mode = #tpu.pipeline_mode<synchronous>, transform_indices = @transform_6, window_bounds = array<i64: 8, 1, 32>}, {pipeline_mode = #tpu.pipeline_mode<synchronous>, transform_indices = @transform_7, window_bounds = array<i64: 8, 1, 32>}, {pipeline_mode = #tpu.pipeline_mode<synchronous>, transform_indices = @transform_8, window_bounds = array<i64: 32, 6>}, {pipeline_mode = #tpu.pipeline_mode<synchronous>, transform_indices = @transform_9, window_bounds = array<i64: 1, 3>}, {transform_indices = @transform_10, window_bounds = array<i64: 1, 16, 3>}]} {
    %c0 = arith.constant 0 : index
    %c0_0 = arith.constant 0 : index
    %c0_1 = arith.constant 0 : index
    %0 = vector.load %arg1[%c0, %c0_0, %c0_1] : memref<1x16x4xf32, #tpu.memory_space<vmem>>, vector<1x16x4xf32>
    %1 = vector.shape_cast %0 : vector<1x16x4xf32> to vector<16x4xf32>
    %c0_2 = arith.constant 0 : index
    %c0_3 = arith.constant 0 : index
    %c0_4 = arith.constant 0 : index
    %2 = vector.load %arg2[%c0_2, %c0_3, %c0_4] : memref<1x16x16xf32, #tpu.memory_space<vmem>>, vector<1x16x16xf32>
    %3 = vector.shape_cast %2 : vector<1x16x16xf32> to vector<16x16xf32>
    %cst = arith.constant dense<0xFF800000> : vector<16xf32>
    %4 = vector.multi_reduction <maximumf>, %3, %cst [1] : vector<16x16xf32> to vector<16xf32>
    %5 = vector.shape_cast %4 : vector<16xf32> to vector<16x1xf32>
    %6 = vector.broadcast %5 : vector<16x1xf32> to vector<16x16xf32>
    %7 = arith.subf %3, %6 : vector<16x16xf32>
    %8 = math.exp %7 : vector<16x16xf32>
    %cst_5 = arith.constant dense<0.000000e+00> : vector<16xf32>
    %9 = vector.multi_reduction <add>, %8, %cst_5 [1] : vector<16x16xf32> to vector<16xf32>
    %10 = vector.shape_cast %9 : vector<16xf32> to vector<16x1xf32>
    %11 = tpu.reciprocal %10 {approx = true} : vector<16x1xf32> -> vector<16x1xf32>
    %12 = vector.broadcast %11 : vector<16x1xf32> to vector<16x16xf32>
    %13 = arith.mulf %8, %12 : vector<16x16xf32>
    %14 = tpu.iota {dimensions = array<i32: 0>} : vector<16x16xi32>
    %15 = tpu.iota {dimensions = array<i32: 1>} : vector<16x16xi32>
    %16 = arith.cmpi eq, %14, %15 : vector<16x16xi32>
    %cst_6 = arith.constant 0.000000e+00 : f32
    %17 = vector.broadcast %cst_6 : f32 to vector<16x16xf32>
    %18 = arith.select %16, %13, %17 : vector<16x16xi1>, vector<16x16xf32>
    %cst_7 = arith.constant dense<0.000000e+00> : vector<16xf32>
    %19 = vector.multi_reduction <add>, %18, %cst_7 [1] : vector<16x16xf32> to vector<16xf32>
    %20 = vector.shape_cast %19 : vector<16xf32> to vector<16x1xf32>
    %c0_8 = arith.constant 0 : index
    %c0_9 = arith.constant 0 : index
    %21 = vector.load %arg3[%c0_8, %c0_9] : memref<4x64xf32, #tpu.memory_space<vmem>>, vector<4x64xf32>
    %c0_10 = arith.constant 0 : index
    %c0_11 = arith.constant 0 : index
    %22 = vector.load %arg4[%c0_10, %c0_11] : memref<1x32xf32, #tpu.memory_space<vmem>>, vector<1x32xf32>
    %c0_12 = arith.constant 0 : index
    %c0_13 = arith.constant 0 : index
    %23 = vector.load %arg5[%c0_12, %c0_13] : memref<1x32xf32, #tpu.memory_space<vmem>>, vector<1x32xf32>
    %cst_14 = arith.constant dense<0.000000e+00> : vector<16x64xf32>
    %24 = tpu.matmul %1, %21, %cst_14 {dimension_numbers = #tpu.dot_dimension_numbers<[1], [0], [0], [1], [0, 0, 1, 1], [], []>} : vector<16x4xf32>, vector<4x64xf32>, vector<16x64xf32> -> vector<16x64xf32>
    %25 = vector.extract_strided_slice %24 {offsets = [0, 0], sizes = [16, 32], strides = [1, 1]} : vector<16x64xf32> to vector<16x32xf32>
    %26 = vector.extract_strided_slice %24 {offsets = [0, 32], sizes = [16, 32], strides = [1, 1]} : vector<16x64xf32> to vector<16x32xf32>
    %27 = arith.subf %25, %26 : vector<16x32xf32>
    %28 = vector.broadcast %20 : vector<16x1xf32> to vector<16x32xf32>
    %29 = arith.mulf %28, %27 : vector<16x32xf32>
    %cst_15 = arith.constant dense<0.000000e+00> : vector<16x32xf32>
    %30 = tpu.matmul %13, %26, %cst_15 {dimension_numbers = #tpu.dot_dimension_numbers<[0], [0], [1], [1], [0, 1, 1, 1], [], []>} : vector<16x16xf32>, vector<16x32xf32>, vector<16x32xf32> -> vector<16x32xf32>
    %31 = arith.addf %29, %30 : vector<16x32xf32>
    %32 = vector.broadcast %22 : vector<1x32xf32> to vector<16x32xf32>
    %33 = arith.mulf %31, %32 : vector<16x32xf32>
    %34 = vector.broadcast %23 : vector<1x32xf32> to vector<16x32xf32>
    %35 = arith.addf %33, %34 : vector<16x32xf32>
    %cst_16 = arith.constant 0.000000e+00 : f32
    %36 = vector.broadcast %cst_16 : f32 to vector<16x32xf32>
    %37 = arith.maximumf %35, %36 : vector<16x32xf32>
    %c0_17 = arith.constant 0 : index
    %c0_18 = arith.constant 0 : index
    %c0_19 = arith.constant 0 : index
    %38 = vector.load %arg6[%c0_17, %c0_18, %c0_19] : memref<8x32x64xf32, #tpu.memory_space<vmem>>, vector<1x32x64xf32>
    %39 = vector.shape_cast %38 : vector<1x32x64xf32> to vector<32x64xf32>
    %c0_20 = arith.constant 0 : index
    %c0_21 = arith.constant 0 : index
    %c0_22 = arith.constant 0 : index
    %40 = vector.load %arg7[%c0_20, %c0_21, %c0_22] : memref<8x1x32xf32, #tpu.memory_space<vmem>>, vector<1x1x32xf32>
    %41 = vector.shape_cast %40 : vector<1x1x32xf32> to vector<1x32xf32>
    %c0_23 = arith.constant 0 : index
    %c0_24 = arith.constant 0 : index
    %c0_25 = arith.constant 0 : index
    %42 = vector.load %arg8[%c0_23, %c0_24, %c0_25] : memref<8x1x32xf32, #tpu.memory_space<vmem>>, vector<1x1x32xf32>
    %43 = vector.shape_cast %42 : vector<1x1x32xf32> to vector<1x32xf32>
    %cst_26 = arith.constant dense<0.000000e+00> : vector<16x64xf32>
    %44 = tpu.matmul %37, %39, %cst_26 {dimension_numbers = #tpu.dot_dimension_numbers<[1], [0], [0], [1], [0, 0, 1, 1], [], []>} : vector<16x32xf32>, vector<32x64xf32>, vector<16x64xf32> -> vector<16x64xf32>
    %45 = vector.extract_strided_slice %44 {offsets = [0, 0], sizes = [16, 32], strides = [1, 1]} : vector<16x64xf32> to vector<16x32xf32>
    %46 = vector.extract_strided_slice %44 {offsets = [0, 32], sizes = [16, 32], strides = [1, 1]} : vector<16x64xf32> to vector<16x32xf32>
    %47 = arith.subf %45, %46 : vector<16x32xf32>
    %48 = vector.broadcast %20 : vector<16x1xf32> to vector<16x32xf32>
    %49 = arith.mulf %48, %47 : vector<16x32xf32>
    %cst_27 = arith.constant dense<0.000000e+00> : vector<16x32xf32>
    %50 = tpu.matmul %13, %46, %cst_27 {dimension_numbers = #tpu.dot_dimension_numbers<[0], [0], [1], [1], [0, 1, 1, 1], [], []>} : vector<16x16xf32>, vector<16x32xf32>, vector<16x32xf32> -> vector<16x32xf32>
    %51 = arith.addf %49, %50 : vector<16x32xf32>
    %52 = vector.broadcast %41 : vector<1x32xf32> to vector<16x32xf32>
    %53 = arith.mulf %51, %52 : vector<16x32xf32>
    %54 = vector.broadcast %43 : vector<1x32xf32> to vector<16x32xf32>
    %55 = arith.addf %53, %54 : vector<16x32xf32>
    %cst_28 = arith.constant 0.000000e+00 : f32
    %56 = vector.broadcast %cst_28 : f32 to vector<16x32xf32>
    %57 = arith.maximumf %55, %56 : vector<16x32xf32>
    %c1 = arith.constant 1 : index
    %c0_29 = arith.constant 0 : index
    %c0_30 = arith.constant 0 : index
    %58 = vector.load %arg6[%c1, %c0_29, %c0_30] : memref<8x32x64xf32, #tpu.memory_space<vmem>>, vector<1x32x64xf32>
    %59 = vector.shape_cast %58 : vector<1x32x64xf32> to vector<32x64xf32>
    %c1_31 = arith.constant 1 : index
    %c0_32 = arith.constant 0 : index
    %c0_33 = arith.constant 0 : index
    %60 = vector.load %arg7[%c1_31, %c0_32, %c0_33] : memref<8x1x32xf32, #tpu.memory_space<vmem>>, vector<1x1x32xf32>
    %61 = vector.shape_cast %60 : vector<1x1x32xf32> to vector<1x32xf32>
    %c1_34 = arith.constant 1 : index
    %c0_35 = arith.constant 0 : index
    %c0_36 = arith.constant 0 : index
    %62 = vector.load %arg8[%c1_34, %c0_35, %c0_36] : memref<8x1x32xf32, #tpu.memory_space<vmem>>, vector<1x1x32xf32>
    %63 = vector.shape_cast %62 : vector<1x1x32xf32> to vector<1x32xf32>
    %cst_37 = arith.constant dense<0.000000e+00> : vector<16x64xf32>
    %64 = tpu.matmul %57, %59, %cst_37 {dimension_numbers = #tpu.dot_dimension_numbers<[1], [0], [0], [1], [0, 0, 1, 1], [], []>} : vector<16x32xf32>, vector<32x64xf32>, vector<16x64xf32> -> vector<16x64xf32>
    %65 = vector.extract_strided_slice %64 {offsets = [0, 0], sizes = [16, 32], strides = [1, 1]} : vector<16x64xf32> to vector<16x32xf32>
    %66 = vector.extract_strided_slice %64 {offsets = [0, 32], sizes = [16, 32], strides = [1, 1]} : vector<16x64xf32> to vector<16x32xf32>
    %67 = arith.subf %65, %66 : vector<16x32xf32>
    %68 = vector.broadcast %20 : vector<16x1xf32> to vector<16x32xf32>
    %69 = arith.mulf %68, %67 : vector<16x32xf32>
    %cst_38 = arith.constant dense<0.000000e+00> : vector<16x32xf32>
    %70 = tpu.matmul %13, %66, %cst_38 {dimension_numbers = #tpu.dot_dimension_numbers<[0], [0], [1], [1], [0, 1, 1, 1], [], []>} : vector<16x16xf32>, vector<16x32xf32>, vector<16x32xf32> -> vector<16x32xf32>
    %71 = arith.addf %69, %70 : vector<16x32xf32>
    %72 = vector.broadcast %61 : vector<1x32xf32> to vector<16x32xf32>
    %73 = arith.mulf %71, %72 : vector<16x32xf32>
    %74 = vector.broadcast %63 : vector<1x32xf32> to vector<16x32xf32>
    %75 = arith.addf %73, %74 : vector<16x32xf32>
    %cst_39 = arith.constant 0.000000e+00 : f32
    %76 = vector.broadcast %cst_39 : f32 to vector<16x32xf32>
    %77 = arith.maximumf %75, %76 : vector<16x32xf32>
    %78 = arith.addf %77, %37 : vector<16x32xf32>
    %c2 = arith.constant 2 : index
    %c0_40 = arith.constant 0 : index
    %c0_41 = arith.constant 0 : index
    %79 = vector.load %arg6[%c2, %c0_40, %c0_41] : memref<8x32x64xf32, #tpu.memory_space<vmem>>, vector<1x32x64xf32>
    %80 = vector.shape_cast %79 : vector<1x32x64xf32> to vector<32x64xf32>
    %c2_42 = arith.constant 2 : index
    %c0_43 = arith.constant 0 : index
    %c0_44 = arith.constant 0 : index
    %81 = vector.load %arg7[%c2_42, %c0_43, %c0_44] : memref<8x1x32xf32, #tpu.memory_space<vmem>>, vector<1x1x32xf32>
    %82 = vector.shape_cast %81 : vector<1x1x32xf32> to vector<1x32xf32>
    %c2_45 = arith.constant 2 : index
    %c0_46 = arith.constant 0 : index
    %c0_47 = arith.constant 0 : index
    %83 = vector.load %arg8[%c2_45, %c0_46, %c0_47] : memref<8x1x32xf32, #tpu.memory_space<vmem>>, vector<1x1x32xf32>
    %84 = vector.shape_cast %83 : vector<1x1x32xf32> to vector<1x32xf32>
    %cst_48 = arith.constant dense<0.000000e+00> : vector<16x64xf32>
    %85 = tpu.matmul %78, %80, %cst_48 {dimension_numbers = #tpu.dot_dimension_numbers<[1], [0], [0], [1], [0, 0, 1, 1], [], []>} : vector<16x32xf32>, vector<32x64xf32>, vector<16x64xf32> -> vector<16x64xf32>
    %86 = vector.extract_strided_slice %85 {offsets = [0, 0], sizes = [16, 32], strides = [1, 1]} : vector<16x64xf32> to vector<16x32xf32>
    %87 = vector.extract_strided_slice %85 {offsets = [0, 32], sizes = [16, 32], strides = [1, 1]} : vector<16x64xf32> to vector<16x32xf32>
    %88 = arith.subf %86, %87 : vector<16x32xf32>
    %89 = vector.broadcast %20 : vector<16x1xf32> to vector<16x32xf32>
    %90 = arith.mulf %89, %88 : vector<16x32xf32>
    %cst_49 = arith.constant dense<0.000000e+00> : vector<16x32xf32>
    %91 = tpu.matmul %13, %87, %cst_49 {dimension_numbers = #tpu.dot_dimension_numbers<[0], [0], [1], [1], [0, 1, 1, 1], [], []>} : vector<16x16xf32>, vector<16x32xf32>, vector<16x32xf32> -> vector<16x32xf32>
    %92 = arith.addf %90, %91 : vector<16x32xf32>
    %93 = vector.broadcast %82 : vector<1x32xf32> to vector<16x32xf32>
    %94 = arith.mulf %92, %93 : vector<16x32xf32>
    %95 = vector.broadcast %84 : vector<1x32xf32> to vector<16x32xf32>
    %96 = arith.addf %94, %95 : vector<16x32xf32>
    %cst_50 = arith.constant 0.000000e+00 : f32
    %97 = vector.broadcast %cst_50 : f32 to vector<16x32xf32>
    %98 = arith.maximumf %96, %97 : vector<16x32xf32>
    %c3 = arith.constant 3 : index
    %c0_51 = arith.constant 0 : index
    %c0_52 = arith.constant 0 : index
    %99 = vector.load %arg6[%c3, %c0_51, %c0_52] : memref<8x32x64xf32, #tpu.memory_space<vmem>>, vector<1x32x64xf32>
    %100 = vector.shape_cast %99 : vector<1x32x64xf32> to vector<32x64xf32>
    %c3_53 = arith.constant 3 : index
    %c0_54 = arith.constant 0 : index
    %c0_55 = arith.constant 0 : index
    %101 = vector.load %arg7[%c3_53, %c0_54, %c0_55] : memref<8x1x32xf32, #tpu.memory_space<vmem>>, vector<1x1x32xf32>
    %102 = vector.shape_cast %101 : vector<1x1x32xf32> to vector<1x32xf32>
    %c3_56 = arith.constant 3 : index
    %c0_57 = arith.constant 0 : index
    %c0_58 = arith.constant 0 : index
    %103 = vector.load %arg8[%c3_56, %c0_57, %c0_58] : memref<8x1x32xf32, #tpu.memory_space<vmem>>, vector<1x1x32xf32>
    %104 = vector.shape_cast %103 : vector<1x1x32xf32> to vector<1x32xf32>
    %cst_59 = arith.constant dense<0.000000e+00> : vector<16x64xf32>
    %105 = tpu.matmul %98, %100, %cst_59 {dimension_numbers = #tpu.dot_dimension_numbers<[1], [0], [0], [1], [0, 0, 1, 1], [], []>} : vector<16x32xf32>, vector<32x64xf32>, vector<16x64xf32> -> vector<16x64xf32>
    %106 = vector.extract_strided_slice %105 {offsets = [0, 0], sizes = [16, 32], strides = [1, 1]} : vector<16x64xf32> to vector<16x32xf32>
    %107 = vector.extract_strided_slice %105 {offsets = [0, 32], sizes = [16, 32], strides = [1, 1]} : vector<16x64xf32> to vector<16x32xf32>
    %108 = arith.subf %106, %107 : vector<16x32xf32>
    %109 = vector.broadcast %20 : vector<16x1xf32> to vector<16x32xf32>
    %110 = arith.mulf %109, %108 : vector<16x32xf32>
    %cst_60 = arith.constant dense<0.000000e+00> : vector<16x32xf32>
    %111 = tpu.matmul %13, %107, %cst_60 {dimension_numbers = #tpu.dot_dimension_numbers<[0], [0], [1], [1], [0, 1, 1, 1], [], []>} : vector<16x16xf32>, vector<16x32xf32>, vector<16x32xf32> -> vector<16x32xf32>
    %112 = arith.addf %110, %111 : vector<16x32xf32>
    %113 = vector.broadcast %102 : vector<1x32xf32> to vector<16x32xf32>
    %114 = arith.mulf %112, %113 : vector<16x32xf32>
    %115 = vector.broadcast %104 : vector<1x32xf32> to vector<16x32xf32>
    %116 = arith.addf %114, %115 : vector<16x32xf32>
    %cst_61 = arith.constant 0.000000e+00 : f32
    %117 = vector.broadcast %cst_61 : f32 to vector<16x32xf32>
    %118 = arith.maximumf %116, %117 : vector<16x32xf32>
    %119 = arith.addf %118, %78 : vector<16x32xf32>
    %c4 = arith.constant 4 : index
    %c0_62 = arith.constant 0 : index
    %c0_63 = arith.constant 0 : index
    %120 = vector.load %arg6[%c4, %c0_62, %c0_63] : memref<8x32x64xf32, #tpu.memory_space<vmem>>, vector<1x32x64xf32>
    %121 = vector.shape_cast %120 : vector<1x32x64xf32> to vector<32x64xf32>
    %c4_64 = arith.constant 4 : index
    %c0_65 = arith.constant 0 : index
    %c0_66 = arith.constant 0 : index
    %122 = vector.load %arg7[%c4_64, %c0_65, %c0_66] : memref<8x1x32xf32, #tpu.memory_space<vmem>>, vector<1x1x32xf32>
    %123 = vector.shape_cast %122 : vector<1x1x32xf32> to vector<1x32xf32>
    %c4_67 = arith.constant 4 : index
    %c0_68 = arith.constant 0 : index
    %c0_69 = arith.constant 0 : index
    %124 = vector.load %arg8[%c4_67, %c0_68, %c0_69] : memref<8x1x32xf32, #tpu.memory_space<vmem>>, vector<1x1x32xf32>
    %125 = vector.shape_cast %124 : vector<1x1x32xf32> to vector<1x32xf32>
    %cst_70 = arith.constant dense<0.000000e+00> : vector<16x64xf32>
    %126 = tpu.matmul %119, %121, %cst_70 {dimension_numbers = #tpu.dot_dimension_numbers<[1], [0], [0], [1], [0, 0, 1, 1], [], []>} : vector<16x32xf32>, vector<32x64xf32>, vector<16x64xf32> -> vector<16x64xf32>
    %127 = vector.extract_strided_slice %126 {offsets = [0, 0], sizes = [16, 32], strides = [1, 1]} : vector<16x64xf32> to vector<16x32xf32>
    %128 = vector.extract_strided_slice %126 {offsets = [0, 32], sizes = [16, 32], strides = [1, 1]} : vector<16x64xf32> to vector<16x32xf32>
    %129 = arith.subf %127, %128 : vector<16x32xf32>
    %130 = vector.broadcast %20 : vector<16x1xf32> to vector<16x32xf32>
    %131 = arith.mulf %130, %129 : vector<16x32xf32>
    %cst_71 = arith.constant dense<0.000000e+00> : vector<16x32xf32>
    %132 = tpu.matmul %13, %128, %cst_71 {dimension_numbers = #tpu.dot_dimension_numbers<[0], [0], [1], [1], [0, 1, 1, 1], [], []>} : vector<16x16xf32>, vector<16x32xf32>, vector<16x32xf32> -> vector<16x32xf32>
    %133 = arith.addf %131, %132 : vector<16x32xf32>
    %134 = vector.broadcast %123 : vector<1x32xf32> to vector<16x32xf32>
    %135 = arith.mulf %133, %134 : vector<16x32xf32>
    %136 = vector.broadcast %125 : vector<1x32xf32> to vector<16x32xf32>
    %137 = arith.addf %135, %136 : vector<16x32xf32>
    %cst_72 = arith.constant 0.000000e+00 : f32
    %138 = vector.broadcast %cst_72 : f32 to vector<16x32xf32>
    %139 = arith.maximumf %137, %138 : vector<16x32xf32>
    %c5 = arith.constant 5 : index
    %c0_73 = arith.constant 0 : index
    %c0_74 = arith.constant 0 : index
    %140 = vector.load %arg6[%c5, %c0_73, %c0_74] : memref<8x32x64xf32, #tpu.memory_space<vmem>>, vector<1x32x64xf32>
    %141 = vector.shape_cast %140 : vector<1x32x64xf32> to vector<32x64xf32>
    %c5_75 = arith.constant 5 : index
    %c0_76 = arith.constant 0 : index
    %c0_77 = arith.constant 0 : index
    %142 = vector.load %arg7[%c5_75, %c0_76, %c0_77] : memref<8x1x32xf32, #tpu.memory_space<vmem>>, vector<1x1x32xf32>
    %143 = vector.shape_cast %142 : vector<1x1x32xf32> to vector<1x32xf32>
    %c5_78 = arith.constant 5 : index
    %c0_79 = arith.constant 0 : index
    %c0_80 = arith.constant 0 : index
    %144 = vector.load %arg8[%c5_78, %c0_79, %c0_80] : memref<8x1x32xf32, #tpu.memory_space<vmem>>, vector<1x1x32xf32>
    %145 = vector.shape_cast %144 : vector<1x1x32xf32> to vector<1x32xf32>
    %cst_81 = arith.constant dense<0.000000e+00> : vector<16x64xf32>
    %146 = tpu.matmul %139, %141, %cst_81 {dimension_numbers = #tpu.dot_dimension_numbers<[1], [0], [0], [1], [0, 0, 1, 1], [], []>} : vector<16x32xf32>, vector<32x64xf32>, vector<16x64xf32> -> vector<16x64xf32>
    %147 = vector.extract_strided_slice %146 {offsets = [0, 0], sizes = [16, 32], strides = [1, 1]} : vector<16x64xf32> to vector<16x32xf32>
    %148 = vector.extract_strided_slice %146 {offsets = [0, 32], sizes = [16, 32], strides = [1, 1]} : vector<16x64xf32> to vector<16x32xf32>
    %149 = arith.subf %147, %148 : vector<16x32xf32>
    %150 = vector.broadcast %20 : vector<16x1xf32> to vector<16x32xf32>
    %151 = arith.mulf %150, %149 : vector<16x32xf32>
    %cst_82 = arith.constant dense<0.000000e+00> : vector<16x32xf32>
    %152 = tpu.matmul %13, %148, %cst_82 {dimension_numbers = #tpu.dot_dimension_numbers<[0], [0], [1], [1], [0, 1, 1, 1], [], []>} : vector<16x16xf32>, vector<16x32xf32>, vector<16x32xf32> -> vector<16x32xf32>
    %153 = arith.addf %151, %152 : vector<16x32xf32>
    %154 = vector.broadcast %143 : vector<1x32xf32> to vector<16x32xf32>
    %155 = arith.mulf %153, %154 : vector<16x32xf32>
    %156 = vector.broadcast %145 : vector<1x32xf32> to vector<16x32xf32>
    %157 = arith.addf %155, %156 : vector<16x32xf32>
    %cst_83 = arith.constant 0.000000e+00 : f32
    %158 = vector.broadcast %cst_83 : f32 to vector<16x32xf32>
    %159 = arith.maximumf %157, %158 : vector<16x32xf32>
    %160 = arith.addf %159, %119 : vector<16x32xf32>
    %c6 = arith.constant 6 : index
    %c0_84 = arith.constant 0 : index
    %c0_85 = arith.constant 0 : index
    %161 = vector.load %arg6[%c6, %c0_84, %c0_85] : memref<8x32x64xf32, #tpu.memory_space<vmem>>, vector<1x32x64xf32>
    %162 = vector.shape_cast %161 : vector<1x32x64xf32> to vector<32x64xf32>
    %c6_86 = arith.constant 6 : index
    %c0_87 = arith.constant 0 : index
    %c0_88 = arith.constant 0 : index
    %163 = vector.load %arg7[%c6_86, %c0_87, %c0_88] : memref<8x1x32xf32, #tpu.memory_space<vmem>>, vector<1x1x32xf32>
    %164 = vector.shape_cast %163 : vector<1x1x32xf32> to vector<1x32xf32>
    %c6_89 = arith.constant 6 : index
    %c0_90 = arith.constant 0 : index
    %c0_91 = arith.constant 0 : index
    %165 = vector.load %arg8[%c6_89, %c0_90, %c0_91] : memref<8x1x32xf32, #tpu.memory_space<vmem>>, vector<1x1x32xf32>
    %166 = vector.shape_cast %165 : vector<1x1x32xf32> to vector<1x32xf32>
    %cst_92 = arith.constant dense<0.000000e+00> : vector<16x64xf32>
    %167 = tpu.matmul %160, %162, %cst_92 {dimension_numbers = #tpu.dot_dimension_numbers<[1], [0], [0], [1], [0, 0, 1, 1], [], []>} : vector<16x32xf32>, vector<32x64xf32>, vector<16x64xf32> -> vector<16x64xf32>
    %168 = vector.extract_strided_slice %167 {offsets = [0, 0], sizes = [16, 32], strides = [1, 1]} : vector<16x64xf32> to vector<16x32xf32>
    %169 = vector.extract_strided_slice %167 {offsets = [0, 32], sizes = [16, 32], strides = [1, 1]} : vector<16x64xf32> to vector<16x32xf32>
    %170 = arith.subf %168, %169 : vector<16x32xf32>
    %171 = vector.broadcast %20 : vector<16x1xf32> to vector<16x32xf32>
    %172 = arith.mulf %171, %170 : vector<16x32xf32>
    %cst_93 = arith.constant dense<0.000000e+00> : vector<16x32xf32>
    %173 = tpu.matmul %13, %169, %cst_93 {dimension_numbers = #tpu.dot_dimension_numbers<[0], [0], [1], [1], [0, 1, 1, 1], [], []>} : vector<16x16xf32>, vector<16x32xf32>, vector<16x32xf32> -> vector<16x32xf32>
    %174 = arith.addf %172, %173 : vector<16x32xf32>
    %175 = vector.broadcast %164 : vector<1x32xf32> to vector<16x32xf32>
    %176 = arith.mulf %174, %175 : vector<16x32xf32>
    %177 = vector.broadcast %166 : vector<1x32xf32> to vector<16x32xf32>
    %178 = arith.addf %176, %177 : vector<16x32xf32>
    %cst_94 = arith.constant 0.000000e+00 : f32
    %179 = vector.broadcast %cst_94 : f32 to vector<16x32xf32>
    %180 = arith.maximumf %178, %179 : vector<16x32xf32>
    %c7 = arith.constant 7 : index
    %c0_95 = arith.constant 0 : index
    %c0_96 = arith.constant 0 : index
    %181 = vector.load %arg6[%c7, %c0_95, %c0_96] : memref<8x32x64xf32, #tpu.memory_space<vmem>>, vector<1x32x64xf32>
    %182 = vector.shape_cast %181 : vector<1x32x64xf32> to vector<32x64xf32>
    %c7_97 = arith.constant 7 : index
    %c0_98 = arith.constant 0 : index
    %c0_99 = arith.constant 0 : index
    %183 = vector.load %arg7[%c7_97, %c0_98, %c0_99] : memref<8x1x32xf32, #tpu.memory_space<vmem>>, vector<1x1x32xf32>
    %184 = vector.shape_cast %183 : vector<1x1x32xf32> to vector<1x32xf32>
    %c7_100 = arith.constant 7 : index
    %c0_101 = arith.constant 0 : index
    %c0_102 = arith.constant 0 : index
    %185 = vector.load %arg8[%c7_100, %c0_101, %c0_102] : memref<8x1x32xf32, #tpu.memory_space<vmem>>, vector<1x1x32xf32>
    %186 = vector.shape_cast %185 : vector<1x1x32xf32> to vector<1x32xf32>
    %cst_103 = arith.constant dense<0.000000e+00> : vector<16x64xf32>
    %187 = tpu.matmul %180, %182, %cst_103 {dimension_numbers = #tpu.dot_dimension_numbers<[1], [0], [0], [1], [0, 0, 1, 1], [], []>} : vector<16x32xf32>, vector<32x64xf32>, vector<16x64xf32> -> vector<16x64xf32>
    %188 = vector.extract_strided_slice %187 {offsets = [0, 0], sizes = [16, 32], strides = [1, 1]} : vector<16x64xf32> to vector<16x32xf32>
    %189 = vector.extract_strided_slice %187 {offsets = [0, 32], sizes = [16, 32], strides = [1, 1]} : vector<16x64xf32> to vector<16x32xf32>
    %190 = arith.subf %188, %189 : vector<16x32xf32>
    %191 = vector.broadcast %20 : vector<16x1xf32> to vector<16x32xf32>
    %192 = arith.mulf %191, %190 : vector<16x32xf32>
    %cst_104 = arith.constant dense<0.000000e+00> : vector<16x32xf32>
    %193 = tpu.matmul %13, %189, %cst_104 {dimension_numbers = #tpu.dot_dimension_numbers<[0], [0], [1], [1], [0, 1, 1, 1], [], []>} : vector<16x16xf32>, vector<16x32xf32>, vector<16x32xf32> -> vector<16x32xf32>
    %194 = arith.addf %192, %193 : vector<16x32xf32>
    %195 = vector.broadcast %184 : vector<1x32xf32> to vector<16x32xf32>
    %196 = arith.mulf %194, %195 : vector<16x32xf32>
    %197 = vector.broadcast %186 : vector<1x32xf32> to vector<16x32xf32>
    %198 = arith.addf %196, %197 : vector<16x32xf32>
    %cst_105 = arith.constant 0.000000e+00 : f32
    %199 = vector.broadcast %cst_105 : f32 to vector<16x32xf32>
    %200 = arith.maximumf %198, %199 : vector<16x32xf32>
    %201 = arith.addf %200, %160 : vector<16x32xf32>
    %c0_106 = arith.constant 0 : index
    %c0_107 = arith.constant 0 : index
    %202 = vector.load %arg9[%c0_106, %c0_107] : memref<32x6xf32, #tpu.memory_space<vmem>>, vector<32x6xf32>
    %c0_108 = arith.constant 0 : index
    %c0_109 = arith.constant 0 : index
    %203 = vector.load %arg10[%c0_108, %c0_109] : memref<1x3xf32, #tpu.memory_space<vmem>>, vector<1x3xf32>
    %cst_110 = arith.constant dense<0.000000e+00> : vector<16x6xf32>
    %204 = tpu.matmul %201, %202, %cst_110 {dimension_numbers = #tpu.dot_dimension_numbers<[1], [0], [0], [1], [0, 0, 1, 1], [], []>} : vector<16x32xf32>, vector<32x6xf32>, vector<16x6xf32> -> vector<16x6xf32>
    %205 = vector.extract_strided_slice %204 {offsets = [0, 0], sizes = [16, 3], strides = [1, 1]} : vector<16x6xf32> to vector<16x3xf32>
    %206 = vector.extract_strided_slice %204 {offsets = [0, 3], sizes = [16, 3], strides = [1, 1]} : vector<16x6xf32> to vector<16x3xf32>
    %207 = arith.subf %205, %206 : vector<16x3xf32>
    %208 = vector.broadcast %20 : vector<16x1xf32> to vector<16x3xf32>
    %209 = arith.mulf %208, %207 : vector<16x3xf32>
    %cst_111 = arith.constant dense<0.000000e+00> : vector<16x3xf32>
    %210 = tpu.matmul %13, %206, %cst_111 {dimension_numbers = #tpu.dot_dimension_numbers<[0], [0], [1], [1], [0, 1, 1, 1], [], []>} : vector<16x16xf32>, vector<16x3xf32>, vector<16x3xf32> -> vector<16x3xf32>
    %211 = arith.addf %209, %210 : vector<16x3xf32>
    %212 = vector.broadcast %203 : vector<1x3xf32> to vector<16x3xf32>
    %213 = arith.addf %211, %212 : vector<16x3xf32>
    %c0_112 = arith.constant 0 : index
    %c0_113 = arith.constant 0 : index
    %c0_114 = arith.constant 0 : index
    %214 = vector.load %arg11[%c0_112, %c0_113, %c0_114] : memref<1x16x3xf32, #tpu.memory_space<vmem>>, vector<1x16x3xf32>
    %215 = vector.shape_cast %214 : vector<1x16x3xf32> to vector<16x3xf32>
    %216 = vector.shape_cast %213 : vector<16x3xf32> to vector<1x16x3xf32>
    tpu.vector_store %arg11[%c0_112, %c0_113, %c0_114], %216 {strides = array<i32>} : memref<1x16x3xf32, #tpu.memory_space<vmem>>, vector<1x16x3xf32>,
    return
  }
  func.func @transform_0(%arg0: i32) -> (i32, i32, i32) {
    %c0_i32 = arith.constant 0 : i32
    %c0_i32_0 = arith.constant 0 : i32
    %c0_i32_1 = arith.constant 0 : i32
    return %arg0, %c0_i32, %c0_i32_0 : i32, i32, i32
  }
  func.func @transform_1(%arg0: i32) -> (i32, i32, i32) {
    %c0_i32 = arith.constant 0 : i32
    %c0_i32_0 = arith.constant 0 : i32
    %c0_i32_1 = arith.constant 0 : i32
    return %arg0, %c0_i32, %c0_i32_0 : i32, i32, i32
  }
  func.func @transform_2(%arg0: i32) -> (i32, i32) {
    %c0_i32 = arith.constant 0 : i32
    %c0_i32_0 = arith.constant 0 : i32
    %c0_i32_1 = arith.constant 0 : i32
    return %c0_i32, %c0_i32_0 : i32, i32
  }
  func.func @transform_3(%arg0: i32) -> (i32, i32) {
    %c0_i32 = arith.constant 0 : i32
    %c0_i32_0 = arith.constant 0 : i32
    %c0_i32_1 = arith.constant 0 : i32
    return %c0_i32, %c0_i32_0 : i32, i32
  }
  func.func @transform_4(%arg0: i32) -> (i32, i32) {
    %c0_i32 = arith.constant 0 : i32
    %c0_i32_0 = arith.constant 0 : i32
    %c0_i32_1 = arith.constant 0 : i32
    return %c0_i32, %c0_i32_0 : i32, i32
  }
  func.func @transform_5(%arg0: i32) -> (i32, i32, i32) {
    %c0_i32 = arith.constant 0 : i32
    %c0_i32_0 = arith.constant 0 : i32
    %c0_i32_1 = arith.constant 0 : i32
    %c0_i32_2 = arith.constant 0 : i32
    return %c0_i32, %c0_i32_0, %c0_i32_1 : i32, i32, i32
  }
  func.func @transform_6(%arg0: i32) -> (i32, i32, i32) {
    %c0_i32 = arith.constant 0 : i32
    %c0_i32_0 = arith.constant 0 : i32
    %c0_i32_1 = arith.constant 0 : i32
    %c0_i32_2 = arith.constant 0 : i32
    return %c0_i32, %c0_i32_0, %c0_i32_1 : i32, i32, i32
  }
  func.func @transform_7(%arg0: i32) -> (i32, i32, i32) {
    %c0_i32 = arith.constant 0 : i32
    %c0_i32_0 = arith.constant 0 : i32
    %c0_i32_1 = arith.constant 0 : i32
    %c0_i32_2 = arith.constant 0 : i32
    return %c0_i32, %c0_i32_0, %c0_i32_1 : i32, i32, i32
  }
  func.func @transform_8(%arg0: i32) -> (i32, i32) {
    %c0_i32 = arith.constant 0 : i32
    %c0_i32_0 = arith.constant 0 : i32
    %c0_i32_1 = arith.constant 0 : i32
    return %c0_i32, %c0_i32_0 : i32, i32
  }
  func.func @transform_9(%arg0: i32) -> (i32, i32) {
    %c0_i32 = arith.constant 0 : i32
    %c0_i32_0 = arith.constant 0 : i32
    %c0_i32_1 = arith.constant 0 : i32
    return %c0_i32, %c0_i32_0 : i32, i32
  }
  func.func @transform_10(%arg0: i32) -> (i32, i32, i32) {
    %c0_i32 = arith.constant 0 : i32
    %c0_i32_0 = arith.constant 0 : i32
    %c0_i32_1 = arith.constant 0 : i32
    return %arg0, %c0_i32, %c0_i32_0 : i32, i32, i32
  }
}

</mosaic_0001>

<bundles_post_ra>
// kernel: tpu_custom_call.1
= control target key start
LH: loop header
LB: loop body
LE: loop exit
PB: predicated region body
PF: predicated region fallthrough
CT: control target
= control target key end

     0   :  { %15 = vsyncpa [#allocation3], 0  ;;  %s3125_s13 = smov 0   ;;  %s3409_s0 = inlined_call_operand.vmem [shape: f32[2,16,4], index: 0, kind: input, shape index: {}]   ;;  %s3410_s1 = inlined_call_operand.vmem [shape: f32[2,16,16], index: 1, kind: input, shape index: {}]   ;;  %s3411_s2 = inlined_call_operand.vmem [shape: f32[4,64], index: 2, kind: input, shape index: {}]   ;;  %s3412_s3 = inlined_call_operand.vmem [shape: f32[1,32], index: 3, kind: input, shape index: {}]   ;;  %s3413_s4 = inlined_call_operand.vmem [shape: f32[1,32], index: 4, kind: input, shape index: {}]   ;;  %s3414_s5 = inlined_call_operand.hbm [shape: f32[8,32,64], index: 5, kind: input, shape index: {}]   ;;  %s3415_s6 = inlined_call_operand.vmem [shape: f32[8,1,32], index: 6, kind: input, shape index: {}]   ;;  %s3416_s7 = inlined_call_operand.vmem [shape: f32[8,1,32], index: 7, kind: input, shape index: {}]   ;;  %s3417_s8 = inlined_call_operand.vmem [shape: f32[32,6], index: 8, kind: input, shape index: {}]   ;;  %s3418_s9 = inlined_call_operand.vmem [shape: f32[1,3], index: 9, kind: input, shape index: {}]   ;;  %s3419_s10 = inlined_call_operand.vmem [shape: f32[2,16,3], index: 10, kind: output, shape index: {}]  }
   0x1 LB: > { %s3131_s14 = sadd.s32 4294967295, %s3063_s13   ;;  %p2520_p0 = scmp.ge.s32.totalorder %s3063_s13, 1  ;;  %s3063_s13 = sphi %s3125_s13, %s21_s13  }
   0x2   : > { %p272_p1 = scmp.lt.s32.totalorder %s3063_s13, 3  ;;  %s3065_s15 = smov [#allocation2]  }
   0x3   : > { %s293_s16 = sshll.u32 %s3065_s15, 4  ;;  %p3420_p3 = scmp.eq.s32.totalorder %s3131_s14, 0  ;;  %s294_s16 = int_to_ptr.vmem [resolvable:$true] %s293_s16 }
   0x4   : > { %p3135_p2 = pnand %p2520_p0, %p272_p1  ;;  %s3025_s21 = scalar_lea.hbm %s3414_s5, 4096 }
   0x5   : > { %p3026_p6 = scmp.ne.s32.totalorder %s3414_s5, %s3025_s21  ;;  %p3032_p10 = scmp.lt.u32.totalorder %s3025_s21, %s3414_s5 }
   0x6   : > { %s3422_s17 = scalar_select %p3135_p2, 1, 0 }
   0x7   : > { %p2997_p4 = pneg %p3135_p2 }
   0x9   : > { %p3144_p5 = pnand %p3420_p3, %p2997_p4 }
   0xb   : > { %p3027_p7 = pneg %p3144_p5 }
   0xd   : > { %p3028_p8 = pnand %p3027_p7, %p3026_p6 }
   0xf   : > { %p3029_p9 = pneg %p3028_p8 }
  0x11   : > { %p3034_p11 = pnand %p3032_p10, %p3029_p9 }
  0x13   : > { %3037 = shalt.err (!%p3034_p11)
}
  0x14   : > { %s3038_s26 = scalar_lea.vmem %s294_s16, 4096  ;;  %p3046_p1 = scmp.lt.s32.totalorder %s294_s16, %s294_s16 }
  0x15   : > { %p3039_p12 = scmp.ne.s32.totalorder %s294_s16, %s3038_s26  ;;  %p3047_p4 = scmp.lt.s32.totalorder %s3038_s26, %s3038_s26 }
  0x17   : > { %p3041_p13 = pnand %p3039_p12, %p3027_p7  ;;  %p3048_p3 = por %p3047_p4, %p3046_p1 }
  0x19   : > { %p3042_p0 = pneg %p3041_p13 }
  0x1b   : > { %p3049_p2 = pnand %p3048_p3, %p3042_p0 }
  0x1d   : > { %3052 = shalt.err (!%p3049_p2)
}
  0x1e   : > { %s3066_s27 = smov 128   ;;  %s3067_s28 = smov 8  }
  0x1f   : > { %3000 = dma.hbm_to_vmem [thread:$0]  (!%p3144_p5), %s3414_s5, 4096, %s294_s16, [#allocation3], %s3066_s27, %s3066_s27, %s3067_s28  }
  0x20   : > { %p3424_p6 = scmp.ne.s32.totalorder %s3422_s17, 0 }
  0x21   : > { %p3425_p8 = scmp.eq.s32.totalorder (!%p3424_p6), %s3131_s14, 0 }
  0x22   : > { %337 = sbr.rel (%p3424_p6) target bundleno = 5733 (0x1665), region = 60 }
  0x29   : > { %3058 = dma.done.wait (%p3425_p8), [#allocation3], 4096   ;;  %p3426_p7 = pmov %p3425_p8 }
  0x2a   : > { %p380_p2 = scmp.lt.s32.totalorder %s3131_s14, 1  ;;  %vm447_vm0 = vcmask 1043456   ;;  %vm399_vm1 = vcmask 130048   ;;  %vm440_vm2 = vcmask 31744   ;;  %v437_v0 = vld [vmem:[%s3411_s2] sm:$0xf]  ;;  %v422_v20 = vlaneseq }
  0x2b   : > { %3060 = vsyncadd (%p3426_p7), [#allocation3], 4294963200  ;;  %2707 = vmatprep.subr.msk.mxu0 %vm447_vm0, %v437_v0  ;;  %v671_v38 = vld [vmem:[#allocation2] sm:$0xff]  ;;  %v672_v39 = vld [vmem:[#allocation2 + $0x8] sm:$0xff]  ;;  %vm677_vm5 = vcmask 261120   ;;  %s3069_s12 = smov 125  }
  0x2c   : > { %s3428_s14 = smov (!%p380_p2, %s3131_s14), 1  ;;  %2708 = vmatpush3.msk.msra.mxu0 %vm447_vm0, %v437_v0  ;;  %v423_v22 = vshrl.u32 %v422_v20, 7  ;;  %v426_v23 = vand.u32 127, %v422_v20  ;;  %v2885_v40 = vpack.c.bf16 %v672_v39, %v671_v38  ;;  %v673_v41 = vld [vmem:[#allocation2 + $0x10] sm:$0xff]  ;;  %v674_v42 = vld [vmem:[#allocation2 + $0x18] sm:$0xff]  ;;  %vm2436_vm6 = vcmask 23552  }
  0x2d   : > { %s3172_s11 = sshll.u32 %s3428_s14, 4  ;;  %s3068_s14 = smov 96   ;;  %v2889_v43 = vpack.c.bf16 %v674_v42, %v673_v41  ;;  %v2536_v49 = vld [vmem:[%s3412_s3] ss:$0 sm:$0xff]  ;;  %v2550_v41 = vld [vmem:[%s3415_s6 + $0x1] ss:$0 sm:$0xff] }
  0x2e   : > { %s389_s16 = scalar_lea.vmem %s3410_s1, %s3172_s11  ;;  %s384_s19 = scalar_lea.vmem %s3409_s0, %s3172_s11  ;;  %vm427_vm3 = vcmp.eq.s32.totalorder %v423_v22, %v426_v23  ;;  %v424_v25 = vadd.s32 8, %v423_v22  ;;  %2886 = vmatprep.subr.bf16.mxu0 %v2885_v40  ;;  %v2537_v54 = vld [vmem:[%s3413_s4] ss:$0 sm:$0xff] }
  0x2f   : > { %v397_v1 = vld [vmem:[%s389_s16] sm:$0xff]  ;;  %v396_v4 = vld [vmem:[%s384_s19 + $0x8] sm:$0xff] }
  0x30   : > { %v395_v2 = vld [vmem:[%s384_s19] sm:$0xff]  ;;  %v400_v3 = vsel %vm399_vm1, %v397_v1, -inf  ;;  %v398_v5 = vld [vmem:[%s389_s16 + $0x8] sm:$0xff]  ;;  %vm428_vm4 = vcmp.eq.s32.totalorder %v424_v25, %v426_v23  ;;  %s394_s19 = scalar_lea.vmem %s3419_s10, %s3172_s11 }
  0x31   : > { %2709 = vmatprep.mubr.msk.f32.mxu0 %vm440_vm2, %v395_v2  ;;  %401 = vmax.xlane.f32.xlu0 %v400_v3  ;;  %v403_v6 = vsel %vm399_vm1, %v398_v5, -inf  ;;  %v867_v3 = vld [vmem:[#allocation2 + $0x20] sm:$0xff] }
  0x32   : > { %2710 = vmatmul.mubr.msk.f32.vlgmr.msra.gmra.mrb[0].mxu0 %vm440_vm2, %v396_v4  ;;  %v868_v4 = vld [vmem:[#allocation2 + $0x28] sm:$0xff] }
  0x33   : > { %2888 = vmatpush3.bf16.msra.mxu0 %v2885_v40 }
  0x34   : > { %2890 = vmatprep.subr.bf16.mxu0 %v2889_v43 }
  0x35   : > { %404 = vmax.xlane.f32.xlu0 %v403_v6  ;;  %v869_v6 = vld [vmem:[#allocation2 + $0x30] sm:$0xff] }
  0x37   : > { %2892 = vmatpush3.bf16.msra.mxu0 %v2889_v43 }
  0xbe   : > { %v402_v7 = vpop.xlane.xlu0 %401 }
  0xbf   : > { %v406_v8 = vsub.f32 %v397_v1, %v402_v7  ;;  %v870_v7 = vld [vmem:[#allocation2 + $0x38] sm:$0xff] }
  0xc1   : > { %v408_v9 = vmul.f32 1.442695, %v406_v8  ;;  %v2901_v8 = vpack.c.bf16 %v870_v7, %v869_v6 }
  0xc2   : > { %v405_v10 = vpop.xlane.xlu0 %404 }
  0xc3   : > { %3017 = vpow2.f32 %v408_v9  ;;  %v407_v11 = vsub.f32 %v398_v5, %v405_v10  ;;  %v2897_v5 = vpack.c.bf16 %v868_v4, %v867_v3  ;;  %v1265_v3 = vld [vmem:[#allocation2 + $0x70] sm:$0xff]  ;;  %v1266_v4 = vld [vmem:[#allocation2 + $0x78] sm:$0xff] }
  0xc5   : > { %v410_v12 = vmul.f32 1.442695, %v407_v11 }
  0xc7   : > { %3019 = vpow2.f32 %v410_v12  ;;  %v2542_v12 = vld [vmem:[%s3415_s6] ss:$0 sm:$0xff] }
  0xcd   : > { %v3018_v13 = vpop.eup %3017 }
  0xce   : > { %v412_v14 = vsel %vm399_vm1, %v3018_v13, 0.0 }
  0xcf   : > { %413 = vadd.xlane.f32.xlu1 %v412_v14 }
  0xd1   : > { %v3020_v15 = vpop.eup %3019 }
  0xd2   : > { %v415_v16 = vsel %vm399_vm1, %v3020_v15, 0.0 }
  0xd3   : > { %416 = vadd.xlane.f32.xlu1 %v415_v16 }
 0x105   : > { %v2711_v17 = vpop.f32.mrb[0].mxu0 }
 0x106   : > { %530 = vrot.lane.b32.xlu1 %v2711_v17, %s3068_s14  ;;  %v517_v18 = vpop.f32.mrb[1].mxu0 }
 0x107   : > { %528 = vrot.lane.b32.xlu0 %v517_v18, %s3068_s14 }
 0x15c   : > { %v414_v19 = vpop.xlane.xlu1 %413 }
 0x15d   : > { %3021 = vrcp.f32 %v414_v19 }
 0x160   : > { %v417_v21 = vpop.xlane.xlu1 %416 }
 0x161   : > { %3023 = vrcp.f32 %v417_v21 }
 0x167   : > { %v3022_v24 = vpop.eup %3021 }
 0x168   : > { %v420_v26 = vmul.f32 %v3022_v24, %v3018_v13 }
 0x16a   : > { %538 = vxpose.xlu1.b32.start [1/2] (short) (narrow) %v420_v26, 16  ;;  %v429_v27 = vsel %vm427_vm3, %v420_v26, 0.0 }
 0x16b   : > { %v3024_v28 = vpop.eup %3023  ;;  %v431_v29 = vsel %vm399_vm1, %v429_v27, 0.0 }
 0x16c   : > { %432 = vadd.xlane.f32.xlu0 %v431_v29  ;;  %v421_v30 = vmul.f32 %v3024_v28, %v3020_v15 }
 0x16e   : > { %539 = vxpose.xlu1.b32.end [2/2] (short) (narrow) %v421_v30, 16  ;;  %v430_v31 = vsel %vm428_vm4, %v421_v30, 0.0 }
 0x16f   : > { %v434_v32 = vsel %vm399_vm1, %v430_v31, 0.0  ;;  %v1066_v31 = vld [vmem:[#allocation2 + $0x40] sm:$0xff] }
 0x170   : > { %435 = vadd.xlane.f32.xlu0 %v434_v32  ;;  %v1067_v32 = vld [vmem:[#allocation2 + $0x48] sm:$0xff] }
 0x178   : > { %v531_v33 = vpop.permute.xlu1 %530 }
 0x179   : > { %v529_v34 = vpop.permute.xlu0 %528  ;;  %v535_v46 = vsub.f32 %v2711_v17, %v531_v33  ;;  %v2543_v17 = vld [vmem:[%s3416_s7] ss:$0 sm:$0xff] }
 0x17a   : > { %v2881_v35 = vpack.c.bf16 %v531_v33, %v529_v34  ;;  %v534_v47 = vsub.f32 %v517_v18, %v529_v34  ;;  %v2909_v33 = vpack.c.bf16 %v1067_v32, %v1066_v31  ;;  %v1068_v34 = vld [vmem:[#allocation2 + $0x50] sm:$0xff] }
 0x17c   : > { %2882 = vmatprep.subr.bf16.mxu1 %v2881_v35 }
 0x17d   : > { %2884 = vmatpush3.bf16.msra.mxu1 %v2881_v35  ;;  %v1069_v35 = vld [vmem:[#allocation2 + $0x58] sm:$0xff] }
 0x17e   : > { %v2913_v38 = vpack.c.bf16 %v1069_v35, %v1068_v34  ;;  %v2566_v35 = vld [vmem:[%s3415_s6 + $0x3] ss:$0 sm:$0xff] }
 0x1ea   : > { %v3193_v36 = vpop.trf.xlu1 }
 0x1eb   : > { %2716 = vmatprep.mubr.msk.f32.mxu1 %vm399_vm1, %v3193_v36 }
 0x1ee   : > { %v3197_v37 = vpop.trf.xlu1 }
 0x1ef   : > { %2717 = vmatmul.mubr.msk.f32.vlgmr.msra.gmra.mrb[0].mxu1 %vm399_vm1, %v3197_v37 }
 0x1f0   : > { %2734 = vmatprep.mubr.msk.f32.mxu1 %vm399_vm1, %v3193_v36 }
 0x1f9   : > { %v3203_v44 = vpop.xlane.xlu0 %432 }
 0x1fa   : > { %v536_v51 = vmul.f32 %v534_v47, %v3203_v44 }
 0x1fd   : > { %v3205_v45 = vpop.xlane.xlu0 %435 }
 0x1fe   : > { %v537_v48 = vmul.f32 %v535_v46, %v3205_v45 }
 0x2c2   : > { %v2718_v50 = vpop.f32.mrb[0].mxu1 }
 0x2c3   : > { %v652_v52 = vadd.f32 %v2718_v50, %v537_v48  ;;  %v642_v53 = vpop.f32.mrb[1].mxu1  ;;  %v2551_v48 = vld [vmem:[%s3416_s7 + $0x1] ss:$0 sm:$0xff] }
 0x2c4   : > { %v651_v55 = vadd.f32 %v642_v53, %v536_v51 }
 0x2c5   : > { %v660_v56 = vmul.f32 %v2536_v49, %v652_v52 }
 0x2c6   : > { %v659_v57 = vmul.f32 %v2536_v49, %v651_v55 }
 0x2c7   : > { %v3215_v58 = vadd.f32 %v2537_v54, %v660_v56 }
 0x2c8   : > { %v3217_v59 = vadd.f32 %v2537_v54, %v659_v57 }
 0x2c9   : > { %v670_v61 = vmax.f32 %v3215_v58, 0.0 }
 0x2ca   : > { %v669_v60 = vmax.f32 %v3217_v59, 0.0 }
 0x2cc   : > { %2727 = vmatprep.mubr.msk.f32.mxu0 %vm677_vm5, %v669_v60 }
 0x2cd   : > { %2728 = vmatmul.mubr.msk.f32.vlgmr.msra.gmra.mrb[2].mxu0 %vm677_vm5, %v670_v61 }
 0x2ce   : > { %2752 = vmatprep.mubr.msk.f32.mxu0 %vm399_vm1, %v3193_v36 }
 0x3a0   : > { %v2729_v62 = vpop.f32.mrb[2].mxu0 }
 0x3a1   : > { %763 = vrot.lane.b32.xlu1 %v2729_v62, %s3068_s14  ;;  %v750_v63 = vpop.f32.mrb[3].mxu0 }
 0x3a2   : > { %761 = vrot.lane.b32.xlu0 %v750_v63, %s3068_s14 }
 0x413   : > { %v764_v0 = vpop.permute.xlu1 %763 }
 0x414   : > { %v762_v1 = vpop.permute.xlu0 %761  ;;  %v768_v9 = vsub.f32 %v2729_v62, %v764_v0 }
 0x415   : > { %v2893_v2 = vpack.c.bf16 %v764_v0, %v762_v1  ;;  %v767_v10 = vsub.f32 %v750_v63, %v762_v1  ;;  %v1263_v0 = vld [vmem:[#allocation2 + $0x60] sm:$0xff]  ;;  %v1264_v1 = vld [vmem:[#allocation2 + $0x68] sm:$0xff] }
 0x416   : > { %v770_v11 = vmul.f32 %v768_v9, %v3205_v45 }
 0x417   : > { %2894 = vmatprep.subr.bf16.mxu1 %v2893_v2  ;;  %v769_v14 = vmul.f32 %v767_v10, %v3203_v44 }
 0x418   : > { %2896 = vmatpush3.bf16.msra.mxu1 %v2893_v2  ;;  %v2921_v2 = vpack.c.bf16 %v1264_v1, %v1263_v0 }
 0x419   : > { %2898 = vmatprep.subr.bf16.mxu1 %v2897_v5 }
 0x41b   : > { %2735 = vmatmul.mubr.msk.f32.vlgmr.msra.gmra.mrb[2].mxu1 %vm399_vm1, %v3197_v37 }
 0x41c   : > { %2900 = vmatpush3.bf16.msra.mxu1 %v2897_v5  ;;  %v2925_v5 = vpack.c.bf16 %v1266_v4, %v1265_v3  ;;  %v2574_v4 = vld [vmem:[%s3415_s6 + $0x4] ss:$0 sm:$0xff] }
 0x41d   : > { %2902 = vmatprep.subr.bf16.mxu1 %v2901_v8 }
 0x420   : > { %2904 = vmatpush3.bf16.msra.mxu1 %v2901_v8  ;;  %v2558_v8 = vld [vmem:[%s3415_s6 + $0x2] ss:$0 sm:$0xff] }
 0x4ee   : > { %v2736_v13 = vpop.f32.mrb[2].mxu1 }
 0x4ef   : > { %v847_v15 = vadd.f32 %v2736_v13, %v770_v11  ;;  %v837_v16 = vpop.f32.mrb[3].mxu1  ;;  %v2559_v13 = vld [vmem:[%s3416_s7 + $0x2] ss:$0 sm:$0xff] }
 0x4f0   : > { %v846_v18 = vadd.f32 %v837_v16, %v769_v14 }
 0x4f1   : > { %v855_v19 = vmul.f32 %v2542_v12, %v847_v15 }
 0x4f2   : > { %v854_v20 = vmul.f32 %v2542_v12, %v846_v18 }
 0x4f3   : > { %v863_v21 = vadd.f32 %v2543_v17, %v855_v19 }
 0x4f4   : > { %v862_v22 = vadd.f32 %v2543_v17, %v854_v20 }
 0x4f5   : > { %v865_v24 = vmax.f32 %v863_v21, 0.0 }
 0x4f6   : > { %v864_v23 = vmax.f32 %v862_v22, 0.0 }
 0x4f8   : > { %2745 = vmatprep.mubr.msk.f32.mxu1 %vm677_vm5, %v864_v23 }
 0x4f9   : > { %2746 = vmatmul.mubr.msk.f32.vlgmr.msra.gmra.mrb[4].mxu1 %vm677_vm5, %v865_v24 }
 0x4fa   : > { %2770 = vmatprep.mubr.msk.f32.mxu1 %vm399_vm1, %v3193_v36 }
 0x5cc   : > { %v2747_v25 = vpop.f32.mrb[4].mxu1 }
 0x5cd   : > { %v947_v26 = vpop.f32.mrb[5].mxu1 }
 0x5ce   : > { %958 = vrot.lane.b32.xlu0 %v947_v26, %s3068_s14 }
 0x5d2   : > { %960 = vrot.lane.b32.xlu0 %v2747_v25, %s3068_s14 }
 0x640   : > { %v959_v27 = vpop.permute.xlu0 %958 }
 0x641   : > { %v964_v28 = vsub.f32 %v947_v26, %v959_v27  ;;  %v1462_v26 = vld [vmem:[#allocation2 + $0x80] sm:$0xff] }
 0x643   : > { %v966_v43 = vmul.f32 %v964_v28, %v3203_v44 }
 0x644   : > { %v961_v29 = vpop.permute.xlu0 %960 }
 0x645   : > { %v2905_v30 = vpack.c.bf16 %v961_v29, %v959_v27  ;;  %v965_v39 = vsub.f32 %v2747_v25, %v961_v29  ;;  %v1463_v27 = vld [vmem:[#allocation2 + $0x88] sm:$0xff]  ;;  %v1464_v29 = vld [vmem:[#allocation2 + $0x90] sm:$0xff] }
 0x646   : > { %v2933_v28 = vpack.c.bf16 %v1463_v27, %v1462_v26  ;;  %v1861_v26 = vld [vmem:[#allocation2 + $0xd8] sm:$0xff] }
 0x647   : > { %2906 = vmatprep.subr.bf16.mxu0 %v2905_v30  ;;  %v967_v40 = vmul.f32 %v965_v39, %v3205_v45 }
 0x648   : > { %2908 = vmatpush3.bf16.msra.mxu0 %v2905_v30  ;;  %v1465_v30 = vld [vmem:[#allocation2 + $0x98] sm:$0xff] }
 0x649   : > { %2910 = vmatprep.subr.bf16.mxu0 %v2909_v33  ;;  %v2937_v31 = vpack.c.bf16 %v1465_v30, %v1464_v29 }
 0x64b   : > { %2753 = vmatmul.mubr.msk.f32.vlgmr.msra.gmra.mrb[4].mxu0 %vm399_vm1, %v3197_v37 }
 0x64c   : > { %2912 = vmatpush3.bf16.msra.mxu0 %v2909_v33 }
 0x64d   : > { %2914 = vmatprep.subr.bf16.mxu0 %v2913_v38 }
 0x650   : > { %2916 = vmatpush3.bf16.msra.mxu0 %v2913_v38 }
 0x71e   : > { %v2754_v42 = vpop.f32.mrb[4].mxu0 }
 0x71f   : > { %v1044_v46 = vadd.f32 %v2754_v42, %v967_v40  ;;  %v1034_v47 = vpop.f32.mrb[5].mxu0  ;;  %v2567_v42 = vld [vmem:[%s3416_s7 + $0x3] ss:$0 sm:$0xff] }
 0x720   : > { %v1043_v49 = vadd.f32 %v1034_v47, %v966_v43 }
 0x721   : > { %v1052_v50 = vmul.f32 %v2550_v41, %v1044_v46 }
 0x722   : > { %v1051_v51 = vmul.f32 %v2550_v41, %v1043_v49 }
 0x723   : > { %v1060_v52 = vadd.f32 %v2551_v48, %v1052_v50 }
 0x724   : > { %v1059_v53 = vadd.f32 %v2551_v48, %v1051_v51 }
 0x725   : > { %v1062_v54 = vmax.f32 %v1060_v52, 0.0 }
 0x726   : > { %v1061_v55 = vmax.f32 %v1059_v53, 0.0 }
 0x727   : > { %v3263_v57 = vadd.f32 %v1062_v54, %v670_v61 }
 0x728   : > { %v3259_v56 = vadd.f32 %v1061_v55, %v669_v60 }
 0x72a   : > { %2763 = vmatprep.mubr.msk.f32.mxu0 %vm677_vm5, %v3259_v56 }
 0x72b   : > { %2764 = vmatmul.mubr.msk.f32.vlgmr.msra.gmra.mrb[6].mxu0 %vm677_vm5, %v3263_v57 }
 0x72c   : > { %2788 = vmatprep.mubr.msk.f32.mxu0 %vm399_vm1, %v3193_v36 }
 0x7fe   : > { %v2765_v62 = vpop.f32.mrb[6].mxu0 }
 0x7ff   : > { %v1146_v63 = vpop.f32.mrb[7].mxu0 }
 0x800   : > { %1157 = vrot.lane.b32.xlu0 %v1146_v63, %s3068_s14 }
 0x804   : > { %1159 = vrot.lane.b32.xlu0 %v2765_v62, %s3068_s14 }
 0x872   : > { %v1158_v59 = vpop.permute.xlu0 %1157 }
 0x873   : > { %v1163_v60 = vsub.f32 %v1146_v63, %v1158_v59 }
 0x875   : > { %v1165_v10 = vmul.f32 %v1163_v60, %v3203_v44 }
 0x876   : > { %v1160_v58 = vpop.permute.xlu0 %1159 }
 0x877   : > { %v2917_v61 = vpack.c.bf16 %v1160_v58, %v1158_v59  ;;  %v1164_v6 = vsub.f32 %v2765_v62, %v1160_v58  ;;  %v1660_v59 = vld [vmem:[#allocation2 + $0xa8] sm:$0xff]  ;;  %v1661_v58 = vld [vmem:[#allocation2 + $0xb0] sm:$0xff] }
 0x879   : > { %2918 = vmatprep.subr.bf16.mxu1 %v2917_v61  ;;  %v1166_v7 = vmul.f32 %v1164_v6, %v3205_v45 }
 0x87a   : > { %2920 = vmatpush3.bf16.msra.mxu1 %v2917_v61  ;;  %v1662_v61 = vld [vmem:[#allocation2 + $0xb8] sm:$0xff] }
 0x87b   : > { %2922 = vmatprep.subr.bf16.mxu1 %v2921_v2  ;;  %v2949_v0 = vpack.c.bf16 %v1662_v61, %v1661_v58 }
 0x87d   : > { %2771 = vmatmul.mubr.msk.f32.vlgmr.msra.gmra.mrb[6].mxu1 %vm399_vm1, %v3197_v37 }
 0x87e   : > { %2924 = vmatpush3.bf16.msra.mxu1 %v2921_v2 }
 0x87f   : > { %2926 = vmatprep.subr.bf16.mxu1 %v2925_v5 }
 0x882   : > { %2928 = vmatpush3.bf16.msra.mxu1 %v2925_v5 }
 0x950   : > { %v2772_v9 = vpop.f32.mrb[6].mxu1 }
 0x951   : > { %v1243_v11 = vadd.f32 %v2772_v9, %v1166_v7  ;;  %v1233_v12 = vpop.f32.mrb[7].mxu1  ;;  %v2575_v9 = vld [vmem:[%s3416_s7 + $0x4] ss:$0 sm:$0xff] }
 0x952   : > { %v1242_v14 = vadd.f32 %v1233_v12, %v1165_v10 }
 0x953   : > { %v1251_v15 = vmul.f32 %v2558_v8, %v1243_v11 }
 0x954   : > { %v1250_v16 = vmul.f32 %v2558_v8, %v1242_v14 }
 0x955   : > { %v1259_v17 = vadd.f32 %v2559_v13, %v1251_v15 }
 0x956   : > { %v1258_v18 = vadd.f32 %v2559_v13, %v1250_v16 }
 0x957   : > { %v1261_v20 = vmax.f32 %v1259_v17, 0.0 }
 0x958   : > { %v1260_v19 = vmax.f32 %v1258_v18, 0.0 }
 0x95a   : > { %2781 = vmatprep.mubr.msk.f32.mxu1 %vm677_vm5, %v1260_v19 }
 0x95b   : > { %2782 = vmatmul.mubr.msk.f32.vlgmr.msra.gmra.mrb[8].mxu1 %vm677_vm5, %v1261_v20 }
 0x95c   : > { %2806 = vmatprep.mubr.msk.f32.mxu1 %vm399_vm1, %v3193_v36 }
 0xa2e   : > { %v2783_v21 = vpop.f32.mrb[8].mxu1 }
 0xa2f   : > { %1356 = vrot.lane.b32.xlu0 %v2783_v21, %s3068_s14  ;;  %v1343_v22 = vpop.f32.mrb[9].mxu1 }
 0xa30   : > { %1354 = vrot.lane.b32.xlu1 %v1343_v22, %s3068_s14 }
 0xaa1   : > { %v1357_v23 = vpop.permute.xlu0 %1356 }
 0xaa2   : > { %v1355_v24 = vpop.permute.xlu1 %1354  ;;  %v1361_v32 = vsub.f32 %v2783_v21, %v1357_v23 }
 0xaa3   : > { %v2929_v25 = vpack.c.bf16 %v1357_v23, %v1355_v24  ;;  %v1360_v33 = vsub.f32 %v1343_v22, %v1355_v24  ;;  %v1858_v22 = vld [vmem:[#allocation2 + $0xc0] sm:$0xff]  ;;  %v1859_v23 = vld [vmem:[#allocation2 + $0xc8] sm:$0xff] }
 0xaa4   : > { %v1363_v34 = vmul.f32 %v1361_v32, %v3205_v45  ;;  %v2957_v24 = vpack.c.bf16 %v1859_v23, %v1858_v22 }
 0xaa5   : > { %2930 = vmatprep.subr.bf16.mxu0 %v2929_v25  ;;  %v1362_v39 = vmul.f32 %v1360_v33, %v3203_v44 }
 0xaa6   : > { %2932 = vmatpush3.bf16.msra.mxu0 %v2929_v25  ;;  %v1860_v25 = vld [vmem:[#allocation2 + $0xd0] sm:$0xff] }
 0xaa7   : > { %2934 = vmatprep.subr.bf16.mxu0 %v2933_v28  ;;  %v2961_v27 = vpack.c.bf16 %v1861_v26, %v1860_v25  ;;  %v2598_v26 = vld [vmem:[%s3415_s6 + $0x7] ss:$0 sm:$0xff] }
 0xaa9   : > { %2789 = vmatmul.mubr.msk.f32.vlgmr.msra.gmra.mrb[8].mxu0 %vm399_vm1, %v3197_v37 }
 0xaaa   : > { %2936 = vmatpush3.bf16.msra.mxu0 %v2933_v28 }
 0xaab   : > { %2938 = vmatprep.subr.bf16.mxu0 %v2937_v31 }
 0xaae   : > { %2940 = vmatpush3.bf16.msra.mxu0 %v2937_v31  ;;  %v2582_v31 = vld [vmem:[%s3415_s6 + $0x5] ss:$0 sm:$0xff] }
 0xb7c   : > { %v2790_v38 = vpop.f32.mrb[8].mxu0 }
 0xb7d   : > { %v1440_v40 = vadd.f32 %v2790_v38, %v1363_v34  ;;  %v1430_v41 = vpop.f32.mrb[9].mxu0  ;;  %v2583_v38 = vld [vmem:[%s3416_s7 + $0x5] ss:$0 sm:$0xff] }
 0xb7e   : > { %v1439_v43 = vadd.f32 %v1430_v41, %v1362_v39 }
 0xb7f   : > { %v1448_v46 = vmul.f32 %v2566_v35, %v1440_v40 }
 0xb80   : > { %v1447_v47 = vmul.f32 %v2566_v35, %v1439_v43 }
 0xb81   : > { %v1456_v48 = vadd.f32 %v2567_v42, %v1448_v46 }
 0xb82   : > { %v1455_v49 = vadd.f32 %v2567_v42, %v1447_v47 }
 0xb83   : > { %v1458_v50 = vmax.f32 %v1456_v48, 0.0 }
 0xb84   : > { %v1457_v51 = vmax.f32 %v1455_v49, 0.0 }
 0xb85   : > { %v3303_v53 = vadd.f32 %v1458_v50, %v3263_v57  ;;  %v1659_v57 = vld [vmem:[#allocation2 + $0xa0] sm:$0xff] }
 0xb86   : > { %v3300_v52 = vadd.f32 %v1457_v51, %v3259_v56  ;;  %v2945_v60 = vpack.c.bf16 %v1660_v59, %v1659_v57  ;;  %v2058_v57 = vld [vmem:[#allocation2 + $0xf8] sm:$0xff] }
 0xb88   : > { %2799 = vmatprep.mubr.msk.f32.mxu0 %vm677_vm5, %v3300_v52 }
 0xb89   : > { %2800 = vmatmul.mubr.msk.f32.vlgmr.msra.gmra.mrb[10].mxu0 %vm677_vm5, %v3303_v53 }
 0xb8a   : > { %2824 = vmatprep.mubr.msk.f32.mxu0 %vm399_vm1, %v3193_v36 }
 0xc5c   : > { %v2801_v54 = vpop.f32.mrb[10].mxu0 }
 0xc5d   : > { %1555 = vrot.lane.b32.xlu0 %v2801_v54, %s3068_s14  ;;  %v1542_v55 = vpop.f32.mrb[11].mxu0 }
 0xc5e   : > { %1553 = vrot.lane.b32.xlu1 %v1542_v55, %s3068_s14 }
 0xccf   : > { %v1556_v56 = vpop.permute.xlu0 %1555 }
 0xcd0   : > { %v1554_v62 = vpop.permute.xlu1 %1553  ;;  %v1560_v1 = vsub.f32 %v2801_v54, %v1556_v56 }
 0xcd1   : > { %v2941_v63 = vpack.c.bf16 %v1556_v56, %v1554_v62  ;;  %v1559_v2 = vsub.f32 %v1542_v55, %v1554_v62  ;;  %v2056_v56 = vld [vmem:[#allocation2 + $0xe8] sm:$0xff] }
 0xcd2   : > { %v1562_v3 = vmul.f32 %v1560_v1, %v3205_v45 }
 0xcd3   : > { %2942 = vmatprep.subr.bf16.mxu1 %v2941_v63  ;;  %v1561_v6 = vmul.f32 %v1559_v2, %v3203_v44 }
 0xcd4   : > { %2944 = vmatpush3.bf16.msra.mxu1 %v2941_v63  ;;  %v2057_v63 = vld [vmem:[#allocation2 + $0xf0] sm:$0xff] }
 0xcd5   : > { %2946 = vmatprep.subr.bf16.mxu1 %v2945_v60  ;;  %v2973_v59 = vpack.c.bf16 %v2058_v57, %v2057_v63 }
 0xcd7   : > { %2807 = vmatmul.mubr.msk.f32.vlgmr.msra.gmra.mrb[10].mxu1 %vm399_vm1, %v3197_v37 }
 0xcd8   : > { %2948 = vmatpush3.bf16.msra.mxu1 %v2945_v60 }
 0xcd9   : > { %2950 = vmatprep.subr.bf16.mxu1 %v2949_v0 }
 0xcdc   : > { %2952 = vmatpush3.bf16.msra.mxu1 %v2949_v0  ;;  %v2590_v0 = vld [vmem:[%s3415_s6 + $0x6] ss:$0 sm:$0xff] }
 0xdaa   : > { %v2808_v5 = vpop.f32.mrb[10].mxu1 }
 0xdab   : > { %v1639_v7 = vadd.f32 %v2808_v5, %v1562_v3  ;;  %v1629_v8 = vpop.f32.mrb[11].mxu1  ;;  %v2591_v5 = vld [vmem:[%s3416_s7 + $0x6] ss:$0 sm:$0xff] }
 0xdac   : > { %v1638_v10 = vadd.f32 %v1629_v8, %v1561_v6 }
 0xdad   : > { %v1647_v11 = vmul.f32 %v2574_v4, %v1639_v7 }
 0xdae   : > { %v1646_v12 = vmul.f32 %v2574_v4, %v1638_v10 }
 0xdaf   : > { %v1655_v13 = vadd.f32 %v2575_v9, %v1647_v11 }
 0xdb0   : > { %v1654_v14 = vadd.f32 %v2575_v9, %v1646_v12 }
 0xdb1   : > { %v1657_v16 = vmax.f32 %v1655_v13, 0.0 }
 0xdb2   : > { %v1656_v15 = vmax.f32 %v1654_v14, 0.0 }
 0xdb4   : > { %2817 = vmatprep.mubr.msk.f32.mxu1 %vm677_vm5, %v1656_v15 }
 0xdb5   : > { %2818 = vmatmul.mubr.msk.f32.vlgmr.msra.gmra.mrb[12].mxu1 %vm677_vm5, %v1657_v16 }
 0xdb6   : > { %2842 = vmatprep.mubr.msk.f32.mxu1 %vm399_vm1, %v3193_v36 }
 0xe88   : > { %v2819_v17 = vpop.f32.mrb[12].mxu1 }
 0xe89   : > { %1752 = vrot.lane.b32.xlu0 %v2819_v17, %s3068_s14  ;;  %v1739_v18 = vpop.f32.mrb[13].mxu1 }
 0xe8a   : > { %1750 = vrot.lane.b32.xlu1 %v1739_v18, %s3068_s14 }
 0xefb   : > { %v1753_v19 = vpop.permute.xlu0 %1752 }
 0xefc   : > { %v1751_v20 = vpop.permute.xlu1 %1750  ;;  %v1757_v28 = vsub.f32 %v2819_v17, %v1753_v19 }
 0xefd   : > { %v2953_v21 = vpack.c.bf16 %v1753_v19, %v1751_v20  ;;  %v1756_v29 = vsub.f32 %v1739_v18, %v1751_v20  ;;  %v2253_v18 = vld [vmem:[%s3417_s8] sm:$0xff]  ;;  %v2255_v20 = vld [vmem:[%s3417_s8 + $0x10] sm:$0xff] }
 0xefe   : > { %v1759_v30 = vmul.f32 %v1757_v28, %v3205_v45 }
 0xeff   : > { %2954 = vmatprep.subr.bf16.mxu0 %v2953_v21  ;;  %v1758_v33 = vmul.f32 %v1756_v29, %v3203_v44 }
 0xf00   : > { %2956 = vmatpush3.bf16.msra.mxu0 %v2953_v21  ;;  %v2256_v21 = vld [vmem:[%s3417_s8 + $0x18] sm:$0xff] }
 0xf01   : > { %2958 = vmatprep.subr.bf16.mxu0 %v2957_v24  ;;  %v2985_v22 = vpack.c.bf16 %v2256_v21, %v2255_v20 }
 0xf03   : > { %2825 = vmatmul.mubr.msk.f32.vlgmr.msra.gmra.mrb[12].mxu0 %vm399_vm1, %v3197_v37 }
 0xf04   : > { %2960 = vmatpush3.bf16.msra.mxu0 %v2957_v24 }
 0xf05   : > { %2962 = vmatprep.subr.bf16.mxu0 %v2961_v27 }
 0xf08   : > { %2964 = vmatpush3.bf16.msra.mxu0 %v2961_v27 }
 0xfd6   : > { %v2826_v32 = vpop.f32.mrb[12].mxu0 }
 0xfd7   : > { %v1836_v34 = vadd.f32 %v2826_v32, %v1759_v30  ;;  %v1826_v35 = vpop.f32.mrb[13].mxu0 }
 0xfd8   : > { %v1835_v39 = vadd.f32 %v1826_v35, %v1758_v33 }
 0xfd9   : > { %v1844_v40 = vmul.f32 %v2582_v31, %v1836_v34 }
 0xfda   : > { %v1843_v41 = vmul.f32 %v2582_v31, %v1835_v39  ;;  %v2599_v31 = vld [vmem:[%s3416_s7 + $0x7] ss:$0 sm:$0xff] }
 0xfdb   : > { %v1852_v42 = vadd.f32 %v2583_v38, %v1844_v40 }
 0xfdc   : > { %v1851_v43 = vadd.f32 %v2583_v38, %v1843_v41 }
 0xfdd   : > { %v1854_v46 = vmax.f32 %v1852_v42, 0.0 }
 0xfde   : > { %v1853_v47 = vmax.f32 %v1851_v43, 0.0 }
 0xfdf   : > { %v3343_v49 = vadd.f32 %v1854_v46, %v3303_v53  ;;  %v2055_v53 = vld [vmem:[#allocation2 + $0xe0] sm:$0xff] }
 0xfe0   : > { %v3340_v48 = vadd.f32 %v1853_v47, %v3300_v52  ;;  %v2969_v62 = vpack.c.bf16 %v2056_v56, %v2055_v53 }
 0xfe2   : > { %2835 = vmatprep.mubr.msk.f32.mxu0 %vm677_vm5, %v3340_v48 }
 0xfe3   : > { %2836 = vmatmul.mubr.msk.f32.vlgmr.msra.gmra.mrb[14].mxu0 %vm677_vm5, %v3343_v49 }
 0xfe4   : > { %2860 = vmatprep.mubr.msk.f32.mxu0 %vm399_vm1, %v3193_v36 }
0x10b6   : > { %v2837_v50 = vpop.f32.mrb[14].mxu0 }
0x10b7   : > { %1951 = vrot.lane.b32.xlu0 %v2837_v50, %s3068_s14  ;;  %v1938_v51 = vpop.f32.mrb[15].mxu0 }
0x10b8   : > { %1949 = vrot.lane.b32.xlu1 %v1938_v51, %s3068_s14 }
0x1129   : > { %v1952_v52 = vpop.permute.xlu0 %1951 }
0x112a   : > { %v1950_v54 = vpop.permute.xlu1 %1949  ;;  %v1956_v60 = vsub.f32 %v2837_v50, %v1952_v52 }
0x112b   : > { %v2965_v55 = vpack.c.bf16 %v1952_v52, %v1950_v54  ;;  %v1955_v58 = vsub.f32 %v1938_v51, %v1950_v54 }
0x112c   : > { %v1958_v61 = vmul.f32 %v1956_v60, %v3205_v45 }
0x112d   : > { %2966 = vmatprep.subr.bf16.mxu1 %v2965_v55  ;;  %v1957_v2 = vmul.f32 %v1955_v58, %v3203_v44 }
0x112e   : > { %2968 = vmatpush3.bf16.msra.mxu1 %v2965_v55 }
0x112f   : > { %2970 = vmatprep.subr.bf16.mxu1 %v2969_v62 }
0x1131   : > { %2843 = vmatmul.mubr.msk.f32.vlgmr.msra.gmra.mrb[14].mxu1 %vm399_vm1, %v3197_v37 }
0x1132   : > { %2972 = vmatpush3.bf16.msra.mxu1 %v2969_v62 }
0x1133   : > { %2974 = vmatprep.subr.bf16.mxu1 %v2973_v59 }
0x1136   : > { %2976 = vmatpush3.bf16.msra.mxu1 %v2973_v59 }
0x1204   : > { %v2844_v1 = vpop.f32.mrb[14].mxu1 }
0x1205   : > { %v2035_v3 = vadd.f32 %v2844_v1, %v1958_v61  ;;  %v2025_v4 = vpop.f32.mrb[15].mxu1 }
0x1206   : > { %v2034_v6 = vadd.f32 %v2025_v4, %v1957_v2 }
0x1207   : > { %v2043_v7 = vmul.f32 %v2590_v0, %v2035_v3 }
0x1208   : > { %v2042_v8 = vmul.f32 %v2590_v0, %v2034_v6 }
0x1209   : > { %v2051_v9 = vadd.f32 %v2591_v5, %v2043_v7 }
0x120a   : > { %v2050_v10 = vadd.f32 %v2591_v5, %v2042_v8 }
0x120b   : > { %v2053_v12 = vmax.f32 %v2051_v9, 0.0 }
0x120c   : > { %v2052_v11 = vmax.f32 %v2050_v10, 0.0 }
0x120e   : > { %2853 = vmatprep.mubr.msk.f32.mxu1 %vm677_vm5, %v2052_v11 }
0x120f   : > { %2854 = vmatmul.mubr.msk.f32.vlgmr.msra.gmra.mrb[16].mxu1 %vm677_vm5, %v2053_v12 }
0x1210   : > { %2878 = vmatprep.mubr.msk.f32.mxu1 %vm399_vm1, %v3193_v36  ;;  %v2254_v36 = vld [vmem:[%s3417_s8 + $0x8] sm:$0xff] }
0x1211   : > { %v2981_v19 = vpack.c.bf16 %v2254_v36, %v2253_v18 }
0x12e2   : > { %v2855_v13 = vpop.f32.mrb[16].mxu1 }
0x12e3   : > { %2148 = vrot.lane.b32.xlu0 %v2855_v13, %s3068_s14  ;;  %v2135_v14 = vpop.f32.mrb[17].mxu1 }
0x12e4   : > { %2146 = vrot.lane.b32.xlu1 %v2135_v14, %s3068_s14 }
0x1355   : > { %v2149_v15 = vpop.permute.xlu0 %2148 }
0x1356   : > { %v2147_v16 = vpop.permute.xlu1 %2146  ;;  %v2153_v23 = vsub.f32 %v2855_v13, %v2149_v15 }
0x1357   : > { %v2977_v17 = vpack.c.bf16 %v2149_v15, %v2147_v16  ;;  %v2152_v24 = vsub.f32 %v2135_v14, %v2147_v16 }
0x1358   : > { %v2155_v25 = vmul.f32 %v2153_v23, %v3205_v45 }
0x1359   : > { %2978 = vmatprep.subr.bf16.mxu0 %v2977_v17  ;;  %v2154_v28 = vmul.f32 %v2152_v24, %v3203_v44 }
0x135a   : > { %2980 = vmatpush3.bf16.msra.mxu0 %v2977_v17 }
0x135b   : > { %2982 = vmatprep.subr.bf16.mxu0 %v2981_v19 }
0x135d   : > { %2861 = vmatmul.mubr.msk.f32.vlgmr.msra.gmra.mrb[16].mxu0 %vm399_vm1, %v3197_v37 }
0x135e   : > { %2984 = vmatpush3.bf16.msra.mxu0 %v2981_v19 }
0x135f   : > { %2986 = vmatprep.subr.bf16.mxu0 %v2985_v22 }
0x1362   : > { %2988 = vmatpush3.bf16.msra.mxu0 %v2985_v22 }
0x1430   : > { %v2862_v27 = vpop.f32.mrb[16].mxu0 }
0x1431   : > { %v2232_v29 = vadd.f32 %v2862_v27, %v2155_v25  ;;  %v2222_v30 = vpop.f32.mrb[17].mxu0 }
0x1432   : > { %v2231_v32 = vadd.f32 %v2222_v30, %v2154_v28 }
0x1433   : > { %v2240_v33 = vmul.f32 %v2598_v26, %v2232_v29 }
0x1434   : > { %v2239_v34 = vmul.f32 %v2598_v26, %v2231_v32 }
0x1435   : > { %v2248_v35 = vadd.f32 %v2599_v31, %v2240_v33 }
0x1436   : > { %v2247_v38 = vadd.f32 %v2599_v31, %v2239_v34 }
0x1437   : > { %v2250_v39 = vmax.f32 %v2248_v35, 0.0 }
0x1438   : > { %v2249_v40 = vmax.f32 %v2247_v38, 0.0 }
0x1439   : > { %v2252_v42 = vadd.f32 %v2250_v39, %v3343_v49  ;;  %v2604_v49 = vld [vmem:[%s3418_s9] ss:$0 sm:$0xff] }
0x143a   : > { %v2251_v41 = vadd.f32 %v2249_v40, %v3340_v48 }
0x143c   : > { %2871 = vmatprep.mubr.msk.f32.mxu0 %vm677_vm5, %v2251_v41 }
0x143d   : > { %2872 = vmatmul.mubr.msk.f32.vlgmr.msra.gmra.mrb[18].mxu0 %vm677_vm5, %v2252_v42 }
0x1510   : > { %v2873_v43 = vpop.f32.mrb[18].mxu0 }
0x1511   : > { %2343 = vrot.lane.b32.xlu0 %v2873_v43, %s3069_s12  ;;  %v2330_v46 = vpop.f32.mrb[19].mxu0 }
0x1512   : > { %2341 = vrot.lane.b32.xlu1 %v2330_v46, %s3069_s12 }
0x1583   : > { %v2344_v47 = vpop.permute.xlu0 %2343 }
0x1584   : > { %v2348_v50 = vsub.f32 %v2873_v43, %v2344_v47  ;;  %v2342_v51 = vpop.permute.xlu1 %2341 }
0x1585   : > { %v2347_v52 = vsub.f32 %v2330_v46, %v2342_v51  ;;  %v2989_v54 = vpack.c.bf16 %v2344_v47, %v2342_v51 }
0x1586   : > { %v2350_v48 = vmul.f32 %v2348_v50, %v3205_v45 }
0x1587   : > { %2990 = vmatprep.subr.bf16.mxu1 %v2989_v54  ;;  %v2349_v53 = vmul.f32 %v2347_v52, %v3203_v44 }
0x1588   : > { %2992 = vmatpush3.bf16.msra.mxu1 %v2989_v54 }
0x158b   : > { %2879 = vmatmul.mubr.msk.f32.vlgmr.msra.gmra.mrb[18].mxu1 %vm399_vm1, %v3197_v37 }
0x165e   : > { %v2880_v55 = vpop.f32.mrb[18].mxu1 }
0x165f   : > { %v2427_v56 = vadd.f32 %v2880_v55, %v2350_v48  ;;  %v2417_v62 = vpop.f32.mrb[19].mxu1 }
0x1660   : > { %v2426_v63 = vadd.f32 %v2417_v62, %v2349_v53 }
0x1661   : > { %v2435_v57 = vadd.f32 %v2604_v49, %v2427_v56 }
0x1662   : > { %v2434_v59 = vadd.f32 %v2604_v49, %v2426_v63 }
0x1663   : > { %2438 = vst.msk [vmem:[%s394_s19 + $0x8] sm:$0xff] %vm2436_vm6, %v2435_v57 }
0x1664   : > { %2437 = vst.msk [vmem:[%s394_s19] sm:$0xff] %vm2436_vm6, %v2434_v59 }
0x1665 PF: > { %s21_s13 = sadd.s32 1, %s3063_s13  }
0x1666   : > { %p18_p3 = scmp.ge.s32.totalorder %s21_s13, 4  }
0x1668   :  { %20 = sbr.rel (!%p18_p3) target bundleno = 1 (0x1), region = 119 }
0x166f   :  { %2460 = vsyncpa [#allocation3], 1 }
0x1670   :  { %2462 = vsyncpa [#allocation3 + $0x1], 1 }

</bundles_post_ra>
